<compile_context>
chip_gen: v6e
topology: v6e:2x2x1
jax: 0.10.0
libtpu: 0.0.40
codegen_flags: <defaults>
</compile_context>

<pallas_src>
import functools

import jax
import jax.numpy as jnp
from jax.experimental import pallas as pl
from jax.experimental.pallas import tpu as pltpu

BN_EPS = 1e-5
NEG_BIG = -1e30


def _attention_kernel(xq_ref, xkv_ref, wt_ref, bt_ref, wpg_ref, bpg_ref,
                      wz_ref, bz_ref, o_ref,
                      theta_sc, m_sc, l_sc, acc_sc, *, tile, n_valid):
    """One (batch, q-tile, kv-tile) grid step.

    xq_ref/xkv_ref : (1, C, T) f32      query / key-value pixel tiles (channels-first)
    wt_ref         : (Cin, C)  bf16     theta conv weight
    bt_ref         : (Cin, 1)  f32
    wpg_ref        : (2Cin, C) bf16     [phi; g] conv weights (fused)
    bpg_ref        : (2Cin, 1) f32
    wz_ref         : (C, Cin)  bf16     W_z conv weight with BN folded in
    bz_ref         : (C, 1)    f32      W_z bias with BN folded in
    o_ref          : (1, C, T) f32
    scratch        : theta (Cin,T) bf16, m/l (T,1) f32, acc (T,Cin) f32
    """
    ki = pl.program_id(2)
    cin = wt_ref.shape[0]

    xq = xq_ref[0]                              # (C, T) f32 (kept f32 for the residual)
    xkv = xkv_ref[0].astype(jnp.bfloat16)       # (C, T) bf16

    @pl.when(ki == 0)
    def _init():
        # theta projection for this q tile, cached across the kv axis.
        th = jax.lax.dot_general(
            wt_ref[...], xq.astype(jnp.bfloat16),
            (((1,), (0,)), ((), ())), preferred_element_type=jnp.float32)
        theta_sc[...] = (th + bt_ref[...]).astype(jnp.bfloat16)      # (Cin, T)
        m_sc[...] = jnp.full_like(m_sc, NEG_BIG)
        l_sc[...] = jnp.zeros_like(l_sc)
        acc_sc[...] = jnp.zeros_like(acc_sc)

    # Fused phi/g projection for the kv tile: (2*Cin, T).
    pg = jax.lax.dot_general(
        wpg_ref[...], xkv, (((1,), (0,)), ((), ())),
        preferred_element_type=jnp.float32) + bpg_ref[...]
    phi_k = pg[:cin].astype(jnp.bfloat16)        # (Cin, T)
    g_k = pg[cin:].astype(jnp.bfloat16)          # (Cin, T)

    # scores (Tq, Tk) = theta^T @ phi  (contract over Cin), f32 accumulation.
    s = jax.lax.dot_general(theta_sc[...], phi_k, (((0,), (0,)), ((), ())),
                            preferred_element_type=jnp.float32)

    if n_valid % tile != 0:  # static: only emitted when N was padded up to the tile
        col = jax.lax.broadcasted_iota(jnp.int32, s.shape, 1) + ki * tile
        s = jnp.where(col < n_valid, s, NEG_BIG)

    # Online softmax update (f32).
    m_prev = m_sc[...]
    m_new = jnp.maximum(m_prev, jnp.max(s, axis=-1, keepdims=True))
    alpha = jnp.exp(m_prev - m_new)
    p = jnp.exp(s - m_new)
    l_sc[...] = alpha * l_sc[...] + jnp.sum(p, axis=-1, keepdims=True)
    pv = jax.lax.dot_general(p.astype(jnp.bfloat16), g_k,
                             (((1,), (1,)), ((), ())),
                             preferred_element_type=jnp.float32)      # (T, Cin)
    acc_sc[...] = alpha * acc_sc[...] + pv
    m_sc[...] = m_new

    @pl.when(ki == pl.num_programs(2) - 1)
    def _finalize():
        y = acc_sc[...] * pl.reciprocal(l_sc[...], approx=True)       # (T, Cin)
        # W_z conv with BN folded, channels-first output: (C, T).
        w_y = jax.lax.dot_general(
            wz_ref[...], y.astype(jnp.bfloat16), (((1,), (1,)), ((), ())),
            preferred_element_type=jnp.float32) + bz_ref[...]
        o_ref[0] = (w_y + xq).astype(o_ref.dtype)                     # residual


def _pick_tile(n):
    """Largest tile in {512, 256, 128} that yields >= 2 tiles; else whole map."""
    for t in (512, 256, 128):
        if n > t:
            return t
    return n


def self_attention(x_nchw, params):
    """x_nchw: (B, C, H, W) float32. params: dict (see __main__)."""
    B, C, H, W = x_nchw.shape
    Cin = C // 2
    N = H * W
    T = _pick_tile(N)
    n_pad = ((N + T - 1) // T) * T

    # NCHW -> (B, C, N): reshape only, no transpose (N stays in the lane dim).
    x_cn = x_nchw.reshape(B, C, N).astype(jnp.float32)
    if n_pad != N:
        x_cn = jnp.pad(x_cn, ((0, 0), (0, 0), (0, n_pad - N)))

    # Fold the eval-mode BatchNorm into the W_z conv (affine in eval mode).
    scale = params["gamma"] * jax.lax.rsqrt(params["var"] + BN_EPS)        # (C,)
    wz_f = (params["wz"] * scale[:, None]).astype(jnp.bfloat16)            # (C, Cin)
    bz_f = ((params["bz"] - params["mean"]) * scale + params["beta"])[:, None]  # (C, 1)

    wt = params["wt"].astype(jnp.bfloat16)                                 # (Cin, C)
    bt = params["bt"][:, None]                                             # (Cin, 1)
    wpg = jnp.concatenate([params["wp"], params["wg"]], axis=0).astype(jnp.bfloat16)  # (2Cin, C)
    bpg = jnp.concatenate([params["bp"], params["bg"]], axis=0)[:, None]              # (2Cin, 1)

    grid = (B, n_pad // T, n_pad // T)

    def rep(arr):  # full-array (replicated) block for small parameter tensors
        return pl.BlockSpec(arr.shape, lambda b, qi, ki: (0,) * arr.ndim)

    flops = 2 * B * (n_pad * C * 3 * Cin + 2 * n_pad * n_pad * Cin + n_pad * Cin * C)
    cost = pl.CostEstimate(flops=flops,
                           transcendentals=B * n_pad * n_pad,
                           bytes_accessed=2 * B * n_pad * C * 4)

    kernel = functools.partial(_attention_kernel, tile=T, n_valid=N)

    out = pl.pallas_call(
        kernel,
        out_shape=jax.ShapeDtypeStruct((B, C, n_pad), jnp.float32),
        grid_spec=pltpu.PrefetchScalarGridSpec(
            num_scalar_prefetch=0,
            grid=grid,
            in_specs=[
                pl.BlockSpec((1, C, T), lambda b, qi, ki: (b, 0, qi)),  # x (query tile)
                pl.BlockSpec((1, C, T), lambda b, qi, ki: (b, 0, ki)),  # x (kv tile)
                rep(wt), rep(bt), rep(wpg), rep(bpg), rep(wz_f), rep(bz_f),
            ],
            out_specs=pl.BlockSpec((1, C, T), lambda b, qi, ki: (b, 0, qi)),
            scratch_shapes=[
                pltpu.VMEM((Cin, T), jnp.bfloat16),   # cached theta for the q tile
                pltpu.VMEM((T, 1), jnp.float32),      # running max  m
                pltpu.VMEM((T, 1), jnp.float32),      # running sum  l
                pltpu.VMEM((T, Cin), jnp.float32),    # output accumulator
            ],
        ),
        compiler_params=pltpu.CompilerParams(
            dimension_semantics=("parallel", "parallel", "arbitrary"),
            vmem_limit_bytes=64 * 1024 * 1024),
        cost_estimate=cost,
    )(x_cn, x_cn, wt, bt, wpg, bpg, wz_f, bz_f)

    return out[:, :, :N].reshape(B, C, H, W)


def ref_forward(x, p):
    """Pure-JAX f32 reference matching the PyTorch module (eval-mode BN)."""
    B, C, H, W = x.shape
    N = H * W
    xf = x.reshape(B, C, N).astype(jnp.float32)
    g = jnp.einsum('oc,bcn->bno', p["wg"], xf) + p["bg"]               # (B, N, Cin)
    th = jnp.einsum('oc,bcn->bno', p["wt"], xf) + p["bt"]              # (B, N, Cin)
    ph = jnp.einsum('oc,bcn->bon', p["wp"], xf) + p["bp"][:, None]     # (B, Cin, N)
    f = jnp.einsum('bnc,bcm->bnm', th, ph)                             # (B, N, N)
    fdc = jax.nn.softmax(f, axis=-1)
    y = jnp.einsum('bnm,bmc->bnc', fdc, g)                             # (B, N, Cin)
    wy = jnp.einsum('oc,bnc->bon', p["wz"], y) + p["bz"][:, None]      # (B, C, N)
    scale = p["gamma"] * jax.lax.rsqrt(p["var"] + BN_EPS)
    wy = (wy - p["mean"][:, None]) * scale[:, None] + p["beta"][:, None]
    return (wy + xf).reshape(B, C, H, W)


if __name__ == "__main__":
    key = jax.random.PRNGKey(0)
    ks = jax.random.split(key, 13)

    B, C, H, W = 2, 8, 16, 16      # N = 256 -> 2 query tiles x 2 kv tiles of 128
    Cin = C // 2
    x = jax.random.normal(ks[0], (B, C, H, W), jnp.float32)

    sc = 0.1
    params = {
        # conv weights kept in the native torch (out, in) layout
        "wg": sc * jax.random.normal(ks[1], (Cin, C), jnp.float32),
        "bg": sc * jax.random.normal(ks[2], (Cin,), jnp.float32),
        "wt": sc * jax.random.normal(ks[3], (Cin, C), jnp.float32),
        "bt": sc * jax.random.normal(ks[4], (Cin,), jnp.float32),
        "wp": sc * jax.random.normal(ks[5], (Cin, C), jnp.float32),
        "bp": sc * jax.random.normal(ks[6], (Cin,), jnp.float32),
        "wz": sc * jax.random.normal(ks[7], (C, Cin), jnp.float32),
        "bz": sc * jax.random.normal(ks[8], (C,), jnp.float32),
        # NOTE: the module inits BN gamma/beta to 0 (W_y branch == 0); use nonzero
        # values here so the attention / W_z / BN path is actually exercised.
        "gamma": 1.0 + sc * jax.random.normal(ks[9], (C,), jnp.float32),
        "beta": sc * jax.random.normal(ks[10], (C,), jnp.float32),
        "mean": sc * jax.random.normal(ks[11], (C,), jnp.float32),
        "var": jnp.abs(1.0 + sc * jax.random.normal(ks[12], (C,), jnp.float32)),
    }

    z = self_attention(x, params)
    jax.block_until_ready(z)

    z_ref = ref_forward(x, params)
    err = float(jnp.max(jnp.abs(z - z_ref)))

    assert z.shape == x.shape and z.dtype == jnp.float32
    assert err < 5e-2, f"max abs err vs reference: {err}"
    print("KERNEL_OK")
</pallas_src>

<mosaic_0001>
module attributes {stable_mosaic.version = 11 : i64} {
  func.func @_attention_kernel(%arg0: i32, %arg1: i32, %arg2: i32, %arg3: memref<1x8x128xf32, #tpu.memory_space<vmem>>, %arg4: memref<1x8x128xf32, #tpu.memory_space<vmem>>, %arg5: memref<4x8xbf16, #tpu.memory_space<vmem>>, %arg6: memref<4x1xf32, #tpu.memory_space<vmem>>, %arg7: memref<8x8xbf16, #tpu.memory_space<vmem>>, %arg8: memref<8x1xf32, #tpu.memory_space<vmem>>, %arg9: memref<8x4xbf16, #tpu.memory_space<vmem>>, %arg10: memref<8x1xf32, #tpu.memory_space<vmem>>, %arg11: memref<1x8x128xf32, #tpu.memory_space<vmem>>, %arg12: memref<4x128xbf16, #tpu.memory_space<vmem>>, %arg13: memref<128x1xf32, #tpu.memory_space<vmem>>, %arg14: memref<128x1xf32, #tpu.memory_space<vmem>>, %arg15: memref<128x4xf32, #tpu.memory_space<vmem>>) attributes {dimension_semantics = [#tpu.dimension_semantics<parallel>, #tpu.dimension_semantics<parallel>, #tpu.dimension_semantics<arbitrary>], iteration_bounds = array<i64: 2, 2, 2>, scalar_prefetch = 0 : i64, scratch_operands = 4 : i64, tpu.core_type = #tpu.core_type<tc>, window_params = [{transform_indices = @transform_0, window_bounds = array<i64: 1, 8, 128>}, {transform_indices = @transform_1, window_bounds = array<i64: 1, 8, 128>}, {pipeline_mode = #tpu.pipeline_mode<synchronous>, transform_indices = @transform_2, window_bounds = array<i64: 4, 8>}, {pipeline_mode = #tpu.pipeline_mode<synchronous>, transform_indices = @transform_3, window_bounds = array<i64: 4, 1>}, {pipeline_mode = #tpu.pipeline_mode<synchronous>, transform_indices = @transform_4, window_bounds = array<i64: 8, 8>}, {pipeline_mode = #tpu.pipeline_mode<synchronous>, transform_indices = @transform_5, window_bounds = array<i64: 8, 1>}, {pipeline_mode = #tpu.pipeline_mode<synchronous>, transform_indices = @transform_6, window_bounds = array<i64: 8, 4>}, {pipeline_mode = #tpu.pipeline_mode<synchronous>, transform_indices = @transform_7, window_bounds = array<i64: 8, 1>}, {transform_indices = @transform_8, window_bounds = array<i64: 1, 8, 128>}]} {
    %c0 = arith.constant 0 : index
    %c0_0 = arith.constant 0 : index
    %c0_1 = arith.constant 0 : index
    %0 = vector.load %arg3[%c0, %c0_0, %c0_1] : memref<1x8x128xf32, #tpu.memory_space<vmem>>, vector<1x8x128xf32>
    %1 = vector.shape_cast %0 : vector<1x8x128xf32> to vector<8x128xf32>
    %c0_2 = arith.constant 0 : index
    %c0_3 = arith.constant 0 : index
    %c0_4 = arith.constant 0 : index
    %2 = vector.load %arg4[%c0_2, %c0_3, %c0_4] : memref<1x8x128xf32, #tpu.memory_space<vmem>>, vector<1x8x128xf32>
    %3 = vector.shape_cast %2 : vector<1x8x128xf32> to vector<8x128xf32>
    %4 = arith.truncf %3 : vector<8x128xf32> to vector<8x128xbf16>
    %c0_i32 = arith.constant 0 : i32
    %5 = arith.cmpi eq, %arg2, %c0_i32 : i32
    %6 = arith.extui %5 : i1 to i32
    %c0_i32_5 = arith.constant 0 : i32
    %7 = arith.cmpi ne, %6, %c0_i32_5 : i32
    scf.if %7 {
      %c0_29 = arith.constant 0 : index
      %c0_30 = arith.constant 0 : index
      %45 = vector.load %arg5[%c0_29, %c0_30] : memref<4x8xbf16, #tpu.memory_space<vmem>>, vector<4x8xbf16>
      %46 = arith.truncf %1 : vector<8x128xf32> to vector<8x128xbf16>
      %cst_31 = arith.constant dense<0.000000e+00> : vector<4x128xf32>
      %47 = tpu.matmul %45, %46, %cst_31 {dimension_numbers = #tpu.dot_dimension_numbers<[1], [0], [0], [1], [0, 0, 1, 1], [], []>} : vector<4x8xbf16>, vector<8x128xbf16>, vector<4x128xf32> -> vector<4x128xf32>
      %c0_32 = arith.constant 0 : index
      %c0_33 = arith.constant 0 : index
      %48 = vector.load %arg6[%c0_32, %c0_33] : memref<4x1xf32, #tpu.memory_space<vmem>>, vector<4x1xf32>
      %49 = vector.broadcast %48 : vector<4x1xf32> to vector<4x128xf32>
      %50 = arith.addf %47, %49 : vector<4x128xf32>
      %51 = arith.truncf %50 : vector<4x128xf32> to vector<4x128xbf16>
      %c0_34 = arith.constant 0 : index
      %c0_35 = arith.constant 0 : index
      %52 = vector.load %arg12[%c0_34, %c0_35] : memref<4x128xbf16, #tpu.memory_space<vmem>>, vector<4x128xbf16>
      tpu.vector_store %arg12[%c0_34, %c0_35], %51 {strides = array<i32>} : memref<4x128xbf16, #tpu.memory_space<vmem>>, vector<4x128xbf16>,
      %cst_36 = arith.constant -1.000000e+30 : f32
      %53 = vector.broadcast %cst_36 : f32 to vector<128x1xf32>
      %c0_37 = arith.constant 0 : index
      %c0_38 = arith.constant 0 : index
      %54 = vector.load %arg13[%c0_37, %c0_38] : memref<128x1xf32, #tpu.memory_space<vmem>>, vector<128x1xf32>
      tpu.vector_store %arg13[%c0_37, %c0_38], %53 {strides = array<i32>} : memref<128x1xf32, #tpu.memory_space<vmem>>, vector<128x1xf32>,
      %cst_39 = arith.constant 0.000000e+00 : f32
      %55 = vector.broadcast %cst_39 : f32 to vector<128x1xf32>
      %c0_40 = arith.constant 0 : index
      %c0_41 = arith.constant 0 : index
      %56 = vector.load %arg14[%c0_40, %c0_41] : memref<128x1xf32, #tpu.memory_space<vmem>>, vector<128x1xf32>
      tpu.vector_store %arg14[%c0_40, %c0_41], %55 {strides = array<i32>} : memref<128x1xf32, #tpu.memory_space<vmem>>, vector<128x1xf32>,
      %cst_42 = arith.constant 0.000000e+00 : f32
      %57 = vector.broadcast %cst_42 : f32 to vector<128x4xf32>
      %c0_43 = arith.constant 0 : index
      %c0_44 = arith.constant 0 : index
      %58 = vector.load %arg15[%c0_43, %c0_44] : memref<128x4xf32, #tpu.memory_space<vmem>>, vector<128x4xf32>
      tpu.vector_store %arg15[%c0_43, %c0_44], %57 {strides = array<i32>} : memref<128x4xf32, #tpu.memory_space<vmem>>, vector<128x4xf32>,
    } else {
    }
    %c0_6 = arith.constant 0 : index
    %c0_7 = arith.constant 0 : index
    %8 = vector.load %arg7[%c0_6, %c0_7] : memref<8x8xbf16, #tpu.memory_space<vmem>>, vector<8x8xbf16>
    %cst = arith.constant dense<0.000000e+00> : vector<8x128xf32>
    %9 = tpu.matmul %8, %4, %cst {dimension_numbers = #tpu.dot_dimension_numbers<[1], [0], [0], [1], [0, 0, 1, 1], [], []>} : vector<8x8xbf16>, vector<8x128xbf16>, vector<8x128xf32> -> vector<8x128xf32>
    %c0_8 = arith.constant 0 : index
    %c0_9 = arith.constant 0 : index
    %10 = vector.load %arg8[%c0_8, %c0_9] : memref<8x1xf32, #tpu.memory_space<vmem>>, vector<8x1xf32>
    %11 = vector.broadcast %10 : vector<8x1xf32> to vector<8x128xf32>
    %12 = arith.addf %9, %11 : vector<8x128xf32>
    %13 = vector.extract_strided_slice %12 {offsets = [0, 0], sizes = [4, 128], strides = [1, 1]} : vector<8x128xf32> to vector<4x128xf32>
    %14 = arith.truncf %13 : vector<4x128xf32> to vector<4x128xbf16>
    %15 = vector.extract_strided_slice %12 {offsets = [4, 0], sizes = [4, 128], strides = [1, 1]} : vector<8x128xf32> to vector<4x128xf32>
    %16 = arith.truncf %15 : vector<4x128xf32> to vector<4x128xbf16>
    %c0_10 = arith.constant 0 : index
    %c0_11 = arith.constant 0 : index
    %17 = vector.load %arg12[%c0_10, %c0_11] : memref<4x128xbf16, #tpu.memory_space<vmem>>, vector<4x128xbf16>
    %cst_12 = arith.constant dense<0.000000e+00> : vector<128x128xf32>
    %18 = tpu.matmul %17, %14, %cst_12 {dimension_numbers = #tpu.dot_dimension_numbers<[0], [0], [1], [1], [0, 1, 1, 1], [], []>} : vector<4x128xbf16>, vector<4x128xbf16>, vector<128x128xf32> -> vector<128x128xf32>
    %c0_13 = arith.constant 0 : index
    %c0_14 = arith.constant 0 : index
    %19 = vector.load %arg13[%c0_13, %c0_14] : memref<128x1xf32, #tpu.memory_space<vmem>>, vector<128x1xf32>
    %cst_15 = arith.constant dense<0xFF800000> : vector<128xf32>
    %20 = vector.multi_reduction <maximumf>, %18, %cst_15 [1] : vector<128x128xf32> to vector<128xf32>
    %21 = vector.shape_cast %20 : vector<128xf32> to vector<128x1xf32>
    %22 = arith.maximumf %19, %21 : vector<128x1xf32>
    %23 = arith.subf %19, %22 : vector<128x1xf32>
    %24 = math.exp %23 : vector<128x1xf32>
    %25 = vector.broadcast %22 : vector<128x1xf32> to vector<128x128xf32>
    %26 = arith.subf %18, %25 : vector<128x128xf32>
    %27 = math.exp %26 : vector<128x128xf32>
    %c0_16 = arith.constant 0 : index
    %c0_17 = arith.constant 0 : index
    %28 = vector.load %arg14[%c0_16, %c0_17] : memref<128x1xf32, #tpu.memory_space<vmem>>, vector<128x1xf32>
    %29 = arith.mulf %24, %28 : vector<128x1xf32>
    %cst_18 = arith.constant dense<0.000000e+00> : vector<128xf32>
    %30 = vector.multi_reduction <add>, %27, %cst_18 [1] : vector<128x128xf32> to vector<128xf32>
    %31 = vector.shape_cast %30 : vector<128xf32> to vector<128x1xf32>
    %32 = arith.addf %29, %31 : vector<128x1xf32>
    %c0_19 = arith.constant 0 : index
    %c0_20 = arith.constant 0 : index
    %33 = vector.load %arg14[%c0_19, %c0_20] : memref<128x1xf32, #tpu.memory_space<vmem>>, vector<128x1xf32>
    tpu.vector_store %arg14[%c0_19, %c0_20], %32 {strides = array<i32>} : memref<128x1xf32, #tpu.memory_space<vmem>>, vector<128x1xf32>,
    %34 = arith.truncf %27 : vector<128x128xf32> to vector<128x128xbf16>
    %cst_21 = arith.constant dense<0.000000e+00> : vector<128x4xf32>
    %35 = tpu.matmul %34, %16, %cst_21 {dimension_numbers = #tpu.dot_dimension_numbers<[1], [1], [0], [0], [0, 0, 1, 0], [], []>} : vector<128x128xbf16>, vector<4x128xbf16>, vector<128x4xf32> -> vector<128x4xf32>
    %c0_22 = arith.constant 0 : index
    %c0_23 = arith.constant 0 : index
    %36 = vector.load %arg15[%c0_22, %c0_23] : memref<128x4xf32, #tpu.memory_space<vmem>>, vector<128x4xf32>
    %37 = vector.broadcast %24 : vector<128x1xf32> to vector<128x4xf32>
    %38 = arith.mulf %37, %36 : vector<128x4xf32>
    %39 = arith.addf %38, %35 : vector<128x4xf32>
    %c0_24 = arith.constant 0 : index
    %c0_25 = arith.constant 0 : index
    %40 = vector.load %arg15[%c0_24, %c0_25] : memref<128x4xf32, #tpu.memory_space<vmem>>, vector<128x4xf32>
    tpu.vector_store %arg15[%c0_24, %c0_25], %39 {strides = array<i32>} : memref<128x4xf32, #tpu.memory_space<vmem>>, vector<128x4xf32>,
    %c0_26 = arith.constant 0 : index
    %c0_27 = arith.constant 0 : index
    %41 = vector.load %arg13[%c0_26, %c0_27] : memref<128x1xf32, #tpu.memory_space<vmem>>, vector<128x1xf32>
    tpu.vector_store %arg13[%c0_26, %c0_27], %22 {strides = array<i32>} : memref<128x1xf32, #tpu.memory_space<vmem>>, vector<128x1xf32>,
    %c1_i32 = arith.constant 1 : i32
    %42 = arith.cmpi eq, %arg2, %c1_i32 : i32
    %43 = arith.extui %42 : i1 to i32
    %c0_i32_28 = arith.constant 0 : i32
    %44 = arith.cmpi ne, %43, %c0_i32_28 : i32
    scf.if %44 {
      %c0_29 = arith.constant 0 : index
      %c0_30 = arith.constant 0 : index
      %45 = vector.load %arg15[%c0_29, %c0_30] : memref<128x4xf32, #tpu.memory_space<vmem>>, vector<128x4xf32>
      %c0_31 = arith.constant 0 : index
      %c0_32 = arith.constant 0 : index
      %46 = vector.load %arg14[%c0_31, %c0_32] : memref<128x1xf32, #tpu.memory_space<vmem>>, vector<128x1xf32>
      %47 = tpu.reciprocal %46 {approx = true} : vector<128x1xf32> -> vector<128x1xf32>
      %48 = vector.broadcast %47 : vector<128x1xf32> to vector<128x4xf32>
      %49 = arith.mulf %45, %48 : vector<128x4xf32>
      %c0_33 = arith.constant 0 : index
      %c0_34 = arith.constant 0 : index
      %50 = vector.load %arg9[%c0_33, %c0_34] : memref<8x4xbf16, #tpu.memory_space<vmem>>, vector<8x4xbf16>
      %51 = arith.truncf %49 : vector<128x4xf32> to vector<128x4xbf16>
      %cst_35 = arith.constant dense<0.000000e+00> : vector<8x128xf32>
      %52 = tpu.matmul %50, %51, %cst_35 {dimension_numbers = #tpu.dot_dimension_numbers<[1], [1], [0], [0], [0, 0, 1, 0], [], []>} : vector<8x4xbf16>, vector<128x4xbf16>, vector<8x128xf32> -> vector<8x128xf32>
      %c0_36 = arith.constant 0 : index
      %c0_37 = arith.constant 0 : index
      %53 = vector.load %arg10[%c0_36, %c0_37] : memref<8x1xf32, #tpu.memory_space<vmem>>, vector<8x1xf32>
      %54 = vector.broadcast %53 : vector<8x1xf32> to vector<8x128xf32>
      %55 = arith.addf %52, %54 : vector<8x128xf32>
      %56 = arith.addf %55, %1 : vector<8x128xf32>
      %c0_38 = arith.constant 0 : index
      %c0_39 = arith.constant 0 : index
      %c0_40 = arith.constant 0 : index
      %57 = vector.load %arg11[%c0_38, %c0_39, %c0_40] : memref<1x8x128xf32, #tpu.memory_space<vmem>>, vector<1x8x128xf32>
      %58 = vector.shape_cast %57 : vector<1x8x128xf32> to vector<8x128xf32>
      %59 = vector.shape_cast %56 : vector<8x128xf32> to vector<1x8x128xf32>
      tpu.vector_store %arg11[%c0_38, %c0_39, %c0_40], %59 {strides = array<i32>} : memref<1x8x128xf32, #tpu.memory_space<vmem>>, vector<1x8x128xf32>,
    } else {
    }
    return
  }
  func.func @transform_0(%arg0: i32, %arg1: i32, %arg2: i32) -> (i32, i32, i32) {
    %c0_i32 = arith.constant 0 : i32
    %c0_i32_0 = arith.constant 0 : i32
    return %arg0, %c0_i32, %arg1 : i32, i32, i32
  }
  func.func @transform_1(%arg0: i32, %arg1: i32, %arg2: i32) -> (i32, i32, i32) {
    %c0_i32 = arith.constant 0 : i32
    %c0_i32_0 = arith.constant 0 : i32
    return %arg0, %c0_i32, %arg2 : i32, i32, i32
  }
  func.func @transform_2(%arg0: i32, %arg1: i32, %arg2: i32) -> (i32, i32) {
    %c0_i32 = arith.constant 0 : i32
    %c0_i32_0 = arith.constant 0 : i32
    %c0_i32_1 = arith.constant 0 : i32
    return %c0_i32, %c0_i32_0 : i32, i32
  }
  func.func @transform_3(%arg0: i32, %arg1: i32, %arg2: i32) -> (i32, i32) {
    %c0_i32 = arith.constant 0 : i32
    %c0_i32_0 = arith.constant 0 : i32
    %c0_i32_1 = arith.constant 0 : i32
    return %c0_i32, %c0_i32_0 : i32, i32
  }
  func.func @transform_4(%arg0: i32, %arg1: i32, %arg2: i32) -> (i32, i32) {
    %c0_i32 = arith.constant 0 : i32
    %c0_i32_0 = arith.constant 0 : i32
    %c0_i32_1 = arith.constant 0 : i32
    return %c0_i32, %c0_i32_0 : i32, i32
  }
  func.func @transform_5(%arg0: i32, %arg1: i32, %arg2: i32) -> (i32, i32) {
    %c0_i32 = arith.constant 0 : i32
    %c0_i32_0 = arith.constant 0 : i32
    %c0_i32_1 = arith.constant 0 : i32
    return %c0_i32, %c0_i32_0 : i32, i32
  }
  func.func @transform_6(%arg0: i32, %arg1: i32, %arg2: i32) -> (i32, i32) {
    %c0_i32 = arith.constant 0 : i32
    %c0_i32_0 = arith.constant 0 : i32
    %c0_i32_1 = arith.constant 0 : i32
    return %c0_i32, %c0_i32_0 : i32, i32
  }
  func.func @transform_7(%arg0: i32, %arg1: i32, %arg2: i32) -> (i32, i32) {
    %c0_i32 = arith.constant 0 : i32
    %c0_i32_0 = arith.constant 0 : i32
    %c0_i32_1 = arith.constant 0 : i32
    return %c0_i32, %c0_i32_0 : i32, i32
  }
  func.func @transform_8(%arg0: i32, %arg1: i32, %arg2: i32) -> (i32, i32, i32) {
    %c0_i32 = arith.constant 0 : i32
    %c0_i32_0 = arith.constant 0 : i32
    return %arg0, %c0_i32, %arg1 : i32, i32, i32
  }
}

</mosaic_0001>

<bundles_post_ra>
// kernel: tpu_custom_call.1
= control target key start
LH: loop header
LB: loop body
LE: loop exit
PB: predicated region body
PF: predicated region fallthrough
CT: control target
= control target key end

     0   :  { %s2982_s0 = inlined_call_operand.hbm [shape: f32[2,8,256], index: 0, kind: input, shape index: {}]   ;;  %s2983_s1 = inlined_call_operand.hbm [shape: f32[2,8,256], index: 1, kind: input, shape index: {}]   ;;  %s2984_s2 = inlined_call_operand.vmem [shape: bf16[4,8], index: 2, kind: input, shape index: {}]   ;;  %s2985_s3 = inlined_call_operand.vmem [shape: f32[4,1], index: 3, kind: input, shape index: {}]   ;;  %s2986_s4 = inlined_call_operand.vmem [shape: bf16[8,8], index: 4, kind: input, shape index: {}]   ;;  %s2987_s5 = inlined_call_operand.vmem [shape: f32[8,1], index: 5, kind: input, shape index: {}]   ;;  %s2988_s6 = inlined_call_operand.vmem [shape: bf16[8,4], index: 6, kind: input, shape index: {}]   ;;  %s2989_s7 = inlined_call_operand.vmem [shape: f32[8,1], index: 7, kind: input, shape index: {}]   ;;  %s2990_s8 = inlined_call_operand.hbm [shape: f32[2,8,256], index: 8, kind: output, shape index: {}]  }
   0x1   :  { %3002 = sst [smem:[#allocation23_spill]] %s2982_s0 }
   0x2   :  { %3003 = sst [smem:[#allocation24_spill]] %s2984_s2 }
   0x3   :  { %3004 = sst [smem:[#allocation25_spill]] %s2985_s3 }
   0x4   :  { %3005 = sst [smem:[#allocation26_spill]] %s2986_s4 }
   0x5   :  { %3006 = sst [smem:[#allocation27_spill]] %s2987_s5 }
   0x6   :  { %3007 = sst [smem:[#allocation28_spill]] %s2988_s6 }
   0x7   :  { %3008 = sst [smem:[#allocation29_spill]] %s2989_s7 }
   0x8   :  { %3009 = sst [smem:[#allocation30_spill]] %s2990_s8 }
   0x9   :  { %13 = vsyncpa [#allocation7], 0 }
   0xa   :  { %15 = vsyncpa [#allocation7 + $0x1], 0 }
   0xb   :  { %16 = vsyncpa [#allocation10], 0 }
   0xc   :  { %18 = vsyncpa [#allocation10 + $0x1], 0 }
   0xd   :  { %19 = vsyncpa [#allocation8], 0 }
   0xe   :  { %21 = vsyncpa [#allocation8 + $0x1], 0  ;;  %s2293_s27 = smov 0   ;;  %s2295_s28 = smov 0  }
   0xf   :  { %s2297_s29 = smov 0   ;;  %s2299_s30 = smov 0  }
  0x10   :  { %s2301_s9 = smov 0   ;;  %s2303_s10 = smov 0  }
  0x11   :  { %s2305_s11 = smov 0   ;;  %s2307_s12 = smov 0  }
  0x12   :  { %s2309_s13 = smov 0   ;;  %s2311_s14 = smov 0  }
  0x13   :  { %s2313_s15 = smov 0   ;;  %s2315_s16 = smov 0  }
  0x14   :  { %s2317_s17 = smov 0  }
  0x15 LB: > { %3010 = sst [smem:[#allocation15_spill]] %s2197_s30  ;;  %s1671_s18 = sadd.s32 4294967295, %s2233_s17   ;;  %s2233_s17 = sphi %s2317_s17, %s27_s17   ;;  %s2229_s16 = sphi %s2315_s16, %s3064_s16   ;;  %s2225_s15 = sphi %s2313_s15, %s3063_s15   ;;  %s2221_s14 = sphi %s2311_s14, %s3062_s14   ;;  %s2217_s13 = sphi %s2309_s13, %s3061_s13   ;;  %s2213_s12 = sphi %s2307_s12, %s3049_s12   ;;  %s2209_s11 = sphi %s2305_s11, %s3060_s11   ;;  %s2205_s10 = sphi %s2303_s10, %s3059_s10   ;;  %s2201_s9 = sphi %s2301_s9, %s3058_s9   ;;  %s2197_s30 = sphi %s2299_s30, %s3057_s30   ;;  %s2193_s29 = sphi %s2297_s29, %s3056_s29   ;;  %s2189_s28 = sphi %s2295_s28, %s3055_s28   ;;  %s2185_s27 = sphi %s2293_s27, %s3054_s27  }
  0x16   : > { %3011 = sst [smem:[#allocation16_spill]] %s2213_s12  ;;  %s1672_s19 = sadd.s32 4294967294, %s2233_s17  }
  0x17   : > { %3012 = sst [smem:[#allocation17_spill]] %s2217_s13  ;;  %p62_p0 = scmp.ne.s32.totalorder %s2205_s10, %s2201_s9 }
  0x18   : > { %3013 = sst [smem:[#allocation18_spill]] %s2225_s15  ;;  %p2996_p1 = scmp.eq.s32.totalorder %s2233_s17, 0 }
  0x19   : > { %p68_p2 = scmp.ne.s32.totalorder %s2201_s9, %s2197_s30  ;;  %p2367_p3 = scmp.eq.s32.totalorder %s1671_s18, 0 }
  0x1a   : > { %p248_p4 = scmp.eq.s32.totalorder %s1671_s18, 7  ;;  %p2373_p5 = por %p2996_p1, %p62_p0 }
  0x1b   : > { %p254_p6 = scmp.eq.s32.totalorder %s1672_s19, 7  ;;  %p2379_p7 = por %p2367_p3, %p68_p2 }
  0x1c   : > { %p2383_p8 = por %p248_p4, %p62_p0  ;;  %p2997_p10 = scmp.lt.s32.totalorder %s2233_s17, 8 }
  0x1d   : > { %p2387_p9 = por %p254_p6, %p68_p2  ;;  %s292_s18 = sand.u32 1, %s2205_s10  }
  0x1e   : > { %s3017_s25 = scalar_select %p2383_p8, 1, 0 }
  0x1f   : > { %s3019_s26 = scalar_select %p2387_p9, 1, 0 }
  0x20   : > { %3018 = sst [smem:[#allocation19_spill]] %s3017_s25  ;;  %s1675_s21 = sshll.u32 %s292_s18, 3 }
  0x21   : > { %3020 = sst [smem:[#allocation20_spill]] %s3019_s26  ;;  %s1676_s20 = sshll.u32 %s2229_s16, 1 }
  0x22   : > { %s301_s19 = sadd.s32 %s2225_s15, %s1676_s20  ;;  %s296_s30 = scalar_lea.vmem [#allocation6], %s1675_s21 }
  0x23   : > { %s305_s8 = sshll.u32 %s296_s30, 4  ;;  %s1677_s12 = sshll.u32 %s301_s19, 7  ;;  %s306_s8 = int_to_ptr.vmem [resolvable:$true] %s305_s8 }
  0x24   : > { %s3021_s0 = sld [smem:[#allocation23_spill]]  ;;  %p2404_p11 = pnand %p2997_p10, %p2373_p5 }
  0x25   : > { %p1681_p12 = scmp.ge.s32.totalorder %s2233_s17, 1  ;;  %p330_p13 = scmp.lt.s32.totalorder %s2233_s17, 9 }
  0x26   : > { %s293_s26 = scalar_lea.sflag [#allocation7], %s292_s18  ;;  %p2039_p0 = pneg %p2404_p11 }
  0x27   : > { %s2050_s21 = scalar_lea.vmem %s306_s8, 128  ;;  %s2235_s30 = smov [#allocation6]  }
  0x28   : > { %p2051_p2 = scmp.ne.s32.totalorder %s306_s8, %s2050_s21  ;;  %s2055_s19 = sshll.u32 %s2235_s30, 4  ;;  %s2056_s19 = int_to_ptr.vmem [resolvable:$false] %s2055_s19 }
  0x29   : > { %s2057_s6 = scalar_lea.vmem %s2056_s19, 256  ;;  %p2058_p1 = scmp.lt.s32.totalorder %s306_s8, %s2056_s19 }
  0x2a   : > { %s303_s7 = scalar_lea.hbm %s3021_s0, %s1677_s12  ;;  %p2053_p4 = pnand %p2051_p2, %p2039_p0 }
  0x2b   : > { %p2059_p9 = scmp.lt.s32.totalorder %s2057_s6, %s2050_s21 }
  0x2c   : > { %p2054_p6 = pneg %p2053_p4 }
  0x2d   : > { %p2060_p5 = por %p2059_p9, %p2058_p1 }
  0x2f   : > { %p2061_p10 = pnand %p2060_p5, %p2054_p6 }
  0x31   : > { %2064 = shalt.err (!%p2061_p10)
}
  0x32   : > { %1812 = dma.hbm_to_vmem [thread:$0]  (!%p2404_p11), %s303_s7, 128, %s306_s8, %s293_s26  }
  0x33   : > { %p2418_p1 = pnand %p1681_p12, %p330_p13  ;;  %s39_s23 = sadd.s32 1, %s2221_s14 }
  0x34   : > { %p40_p9 = scmp.ge.s32.totalorder %s39_s23, 2  ;;  %p90_p10 = scmp.ne.s32.totalorder %s2193_s29, %s2189_s28 }
  0x35   : > { %p96_p0 = scmp.ne.s32.totalorder %s2189_s28, %s2185_s27  ;;  %s312_s25 = sand.u32 1, %s2193_s29  }
  0x36   : > { %s3066_s23 = smov (%p40_p9, %s39_s23), 0  ;;  %s3025_s7 = sadd.s32 1, %s2225_s15 }
  0x37   : > { %3024 = sst [smem:[#allocation21_spill]] %s3066_s23  ;;  %s3068_s7 = smov (!%p40_p9, %s3025_s7), %s2225_s15 }
  0x38   : > { %s79_s8 = ssub.s32 %s2221_s14, %s3066_s23  ;;  %s83_s26 = sadd.s32 1, %s2193_s29 }
  0x39   : > { %p44_p11 = scmp.ge.s32.totalorder %s3068_s7, 2  ;;  %p2439_p12 = por %p96_p0, %p2367_p3 }
  0x3a   : > { %p3027_p13 = scmp.eq.s32.totalorder %s2233_s17, 0  ;;  %s1678_s27 = sshll.u32 %s312_s25, 3 }
  0x3b   : > { %s3070_s7 = smov (%p44_p11, %s3068_s7), 0  ;;  %s3030_s30 = sadd.s32 1, %s2229_s16 }
  0x3c   : > { %p2445_p2 = por %p90_p10, %p3027_p13  ;;  %3029 = sst [smem:[#allocation22_spill]] %s3070_s7 }
  0x3d   : > { %s3072_s30 = smov (!%p44_p11, %s3030_s30), %s2229_s16  ;;  %s321_s22 = sadd.s32 %s2221_s14, %s1676_s20 }
  0x3e   : > { %p48_p4 = scmp.ge.s32.totalorder %s3072_s30, 2  ;;  %s51_s19 = ssub.s32 %s2225_s15, %s3070_s7 }
  0x3f   : > { %s1680_s6 = sshll.u32 %s321_s22, 7  ;;  %s316_s4 = scalar_lea.vmem [#allocation9], %s1678_s27 }
  0x40   : > { %s3074_s30 = smov (%p48_p4, %s3072_s30), 0  ;;  %s323_s23 = scalar_lea.hbm %s2983_s1, %s1680_s6 }
  0x41   : > { %s325_s5 = sshll.u32 %s316_s4, 4  ;;  %s50_s2 = ssub.s32 %s2229_s16, %s3074_s30  ;;  %s326_s5 = int_to_ptr.vmem [resolvable:$true] %s325_s5 }
  0x42   : > { %p3031_p3 = scmp.lt.s32.totalorder %s2233_s17, 8  ;;  %s52_s20 = sor.u32 %s51_s19, %s50_s2 }
  0x43   : > { %s80_s7 = sor.u32 %s79_s8, %s50_s2  ;;  %p53_p5 = scmp.eq.s32.totalorder %s52_s20, 0 }
  0x44   : > { %p2470_p6 = pnand %p3031_p3, %p2445_p2  ;;  %p81_p9 = scmp.eq.s32.totalorder %s80_s7, 0 }
  0x45   : > { %s3033_s22 = sadd.s32 1, %s2205_s10  ;;  %s313_s13 = scalar_lea.sflag [#allocation10], %s312_s25 }
  0x46   : > { %s2477_s15 = scalar_select %p53_p5, %s2205_s10, %s3033_s22  }
  0x47   : > { %s2480_s0 = scalar_select %p81_p9, %s2193_s29, %s83_s26  }
  0x48   : > { %p2067_p10 = pneg %p2470_p6  ;;  %s2078_s4 = scalar_lea.vmem %s326_s5, 128 }
  0x49   : > { %p2079_p0 = scmp.ne.s32.totalorder %s326_s5, %s2078_s4  ;;  %s2236_s21 = smov [#allocation9]  }
  0x4a   : > { %s2083_s27 = sshll.u32 %s2236_s21, 4  ;;  %s2084_s27 = int_to_ptr.vmem [resolvable:$false] %s2083_s27 }
  0x4b   : > { %p2081_p11 = pnand %p2079_p0, %p2067_p10  ;;  %s2085_s19 = scalar_lea.vmem %s2084_s27, 256 }
  0x4c   : > { %p2086_p2 = scmp.lt.s32.totalorder %s326_s5, %s2084_s27  ;;  %p2087_p4 = scmp.lt.s32.totalorder %s2085_s19, %s2078_s4 }
  0x4d   : > { %p2082_p13 = pneg %p2081_p11 }
  0x4e   : > { %p2088_p3 = por %p2087_p4, %p2086_p2 }
  0x50   : > { %p2089_p8 = pnand %p2088_p3, %p2082_p13 }
  0x52   : > { %2092 = shalt.err (!%p2089_p8)
}
  0x53   : > { %1815 = dma.hbm_to_vmem [thread:$0]  (!%p2470_p6), %s323_s23, 128, %s326_s5, %s313_s13  }
  0x54   : > { %334 = sbr.rel (%p2418_p1) target bundleno = 1689 (0x699), region = 52  ;;  %s2489_s2 = sand.u32 (!%p2418_p1), 1, %s2201_s9  }
  0x55   : > { %s1682_s25 = sshll.u32 (!%p2418_p1), %s2489_s2, 3  ;;  %s337_s7 = scalar_lea.sflag (!%p2418_p1), [#allocation7], %s2489_s2 }
  0x56   : > { %s340_s8 = scalar_lea.vmem (!%p2418_p1), [#allocation6], %s1682_s25 }
  0x59   : > { %2172 = dma.done.wait (%p2379_p7), %s337_s7, 128  }
  0x5a   : > { %2174 = vsyncadd (%p2379_p7), %s337_s7, 4294967168  ;;  %s345_s3 = sand.u32 1, %s2189_s28  }
  0x5b   : > { %s1683_s5 = sshll.u32 %s345_s3, 3  ;;  %s346_s12 = scalar_lea.sflag [#allocation10], %s345_s3 }
  0x5c   : > { %s349_s23 = scalar_lea.vmem [#allocation9], %s1683_s5 }
  0x5d   : > { %2176 = dma.done.wait (%p2439_p12), %s346_s12, 128  }
  0x5e   : > { %2178 = vsyncadd (%p2439_p12), %s346_s12, 4294967168  ;;  %v2502_v0 = vld [vmem:[%s340_s8] sm:$0xff]  ;;  %v2504_v1 = vld [vmem:[%s349_s23] sm:$0xff]  ;;  %s2508_s24 = scalar_lea.vmem [#allocation11], %s1682_s25  ;;  %p1685_p7 = scmp.ne.s32.totalorder %s2209_s11, 0 }
  0x5f   : > { %v390_v2 = vpack.c.bf16 %v2504_v1, %v2504_v1  ;;  %s3034_s6 = sld [smem:[#allocation25_spill]] (!%p1685_p7) }
  0x60   : > { %394 = sbr.rel (%p1685_p7) target bundleno = 307 (0x133), region = 64  ;;  %s3035_s13 = sld [smem:[#allocation24_spill]] (!%p1685_p7) }
  0x65   : > { %vm453_vm0 = vcmask 7168   ;;  %vm486_vm1 = vcmask 31744   ;;  %v2237_v3 = vmov 0.0   ;;  %v2238_v4 = vmov -1e+30  }
  0x66   : > { %1734 = vmatprep.subr.bf16.mxu0 %v2237_v3  ;;  %454 = vst.msk [vmem:[#allocation3] sm:$0xff] %vm453_vm0, %v2238_v4  ;;  %455 = vst.msk [vmem:[#allocation3 + $0x8] sm:$0xff] %vm453_vm0, %v2238_v4  ;;  %v396_v5 = vpack.c.bf16 %v2502_v0, %v2502_v0  ;;  %vm407_vm2 = vcmask 1043456   ;;  %vm2239_vm3 = vmmov 0   ;;  %v397_v6 = vld [vmem:[%s3034_s6] sm:$0xf] }
  0x67   : > { %456 = vst.msk [vmem:[#allocation3 + $0x10] sm:$0xff] %vm453_vm0, %v2238_v4  ;;  %457 = vst.msk [vmem:[#allocation3 + $0x18] sm:$0xff] %vm453_vm0, %v2238_v4  ;;  %1736 = vmatprep.mubr.msk.bf16.mxu0 %vm2239_vm3, %v2237_v3  ;;  %v2240_v8 = vmov 0   ;;  %v395_v9 = vld [vmem:[%s3035_s13] sm:$0x3]  ;;  %vm403_vm4 = vcmask 64512  }
  0x68   : > { %458 = vst.msk [vmem:[#allocation3 + $0x20] sm:$0xff] %vm453_vm0, %v2238_v4  ;;  %459 = vst.msk [vmem:[#allocation3 + $0x28] sm:$0xff] %vm453_vm0, %v2238_v4  ;;  %v409_v7 = vsel %vm407_vm2, %v396_v5, 0  ;;  %1936 = vset.pattern.permute.xlu0 %v2240_v8 }
  0x69   : > { %460 = vst.msk [vmem:[#allocation3 + $0x30] sm:$0xff] %vm453_vm0, %v2238_v4  ;;  %461 = vst.msk [vmem:[#allocation3 + $0x38] sm:$0xff] %vm453_vm0, %v2238_v4  ;;  %1735 = vmatpush3.bf16.msra.mxu0 %v409_v7  ;;  %400 = vperm.xlu0 %1936, %v397_v6  }
  0x6a   : > { %462 = vst.msk [vmem:[#allocation3 + $0x40] sm:$0xff] %vm453_vm0, %v2238_v4  ;;  %463 = vst.msk [vmem:[#allocation3 + $0x48] sm:$0xff] %vm453_vm0, %v2238_v4 }
  0x6b   : > { %464 = vst.msk [vmem:[#allocation3 + $0x50] sm:$0xff] %vm453_vm0, %v2238_v4  ;;  %465 = vst.msk [vmem:[#allocation3 + $0x58] sm:$0xff] %vm453_vm0, %v2238_v4 }
  0x6c   : > { %466 = vst.msk [vmem:[#allocation3 + $0x60] sm:$0xff] %vm453_vm0, %v2238_v4  ;;  %467 = vst.msk [vmem:[#allocation3 + $0x68] sm:$0xff] %vm453_vm0, %v2238_v4  ;;  %1737 = vmatmul.mubr.msk.bf16.vlgmr.msra.gmra.mxu0 %vm403_vm4, %v395_v9 }
  0x6d   : > { %468 = vst.msk [vmem:[#allocation3 + $0x70] sm:$0xff] %vm453_vm0, %v2238_v4  ;;  %469 = vst.msk [vmem:[#allocation3 + $0x78] sm:$0xff] %vm453_vm0, %v2238_v4 }
  0x6e   : > { %470 = vst.msk [vmem:[#allocation4] sm:$0xff] %vm453_vm0, %v2237_v3  ;;  %471 = vst.msk [vmem:[#allocation4 + $0x8] sm:$0xff] %vm453_vm0, %v2237_v3 }
  0x6f   : > { %472 = vst.msk [vmem:[#allocation4 + $0x10] sm:$0xff] %vm453_vm0, %v2237_v3  ;;  %473 = vst.msk [vmem:[#allocation4 + $0x18] sm:$0xff] %vm453_vm0, %v2237_v3 }
  0x70   : > { %474 = vst.msk [vmem:[#allocation4 + $0x20] sm:$0xff] %vm453_vm0, %v2237_v3  ;;  %475 = vst.msk [vmem:[#allocation4 + $0x28] sm:$0xff] %vm453_vm0, %v2237_v3 }
  0x71   : > { %476 = vst.msk [vmem:[#allocation4 + $0x30] sm:$0xff] %vm453_vm0, %v2237_v3  ;;  %477 = vst.msk [vmem:[#allocation4 + $0x38] sm:$0xff] %vm453_vm0, %v2237_v3 }
  0x72   : > { %478 = vst.msk [vmem:[#allocation4 + $0x40] sm:$0xff] %vm453_vm0, %v2237_v3  ;;  %479 = vst.msk [vmem:[#allocation4 + $0x48] sm:$0xff] %vm453_vm0, %v2237_v3 }
  0x73   : > { %480 = vst.msk [vmem:[#allocation4 + $0x50] sm:$0xff] %vm453_vm0, %v2237_v3  ;;  %481 = vst.msk [vmem:[#allocation4 + $0x58] sm:$0xff] %vm453_vm0, %v2237_v3 }
  0x74   : > { %482 = vst.msk [vmem:[#allocation4 + $0x60] sm:$0xff] %vm453_vm0, %v2237_v3  ;;  %483 = vst.msk [vmem:[#allocation4 + $0x68] sm:$0xff] %vm453_vm0, %v2237_v3 }
  0x75   : > { %484 = vst.msk [vmem:[#allocation4 + $0x70] sm:$0xff] %vm453_vm0, %v2237_v3  ;;  %485 = vst.msk [vmem:[#allocation4 + $0x78] sm:$0xff] %vm453_vm0, %v2237_v3 }
  0x76   : > { %487 = vst.msk [vmem:[#allocation5] sm:$0xff] %vm486_vm1, %v2237_v3  ;;  %488 = vst.msk [vmem:[#allocation5 + $0x8] sm:$0xff] %vm486_vm1, %v2237_v3 }
  0x77   : > { %489 = vst.msk [vmem:[#allocation5 + $0x10] sm:$0xff] %vm486_vm1, %v2237_v3  ;;  %490 = vst.msk [vmem:[#allocation5 + $0x18] sm:$0xff] %vm486_vm1, %v2237_v3 }
  0x78   : > { %491 = vst.msk [vmem:[#allocation5 + $0x20] sm:$0xff] %vm486_vm1, %v2237_v3  ;;  %492 = vst.msk [vmem:[#allocation5 + $0x28] sm:$0xff] %vm486_vm1, %v2237_v3 }
  0x79   : > { %493 = vst.msk [vmem:[#allocation5 + $0x30] sm:$0xff] %vm486_vm1, %v2237_v3  ;;  %494 = vst.msk [vmem:[#allocation5 + $0x38] sm:$0xff] %vm486_vm1, %v2237_v3 }
  0x7a   : > { %495 = vst.msk [vmem:[#allocation5 + $0x40] sm:$0xff] %vm486_vm1, %v2237_v3  ;;  %496 = vst.msk [vmem:[#allocation5 + $0x48] sm:$0xff] %vm486_vm1, %v2237_v3 }
  0x7b   : > { %497 = vst.msk [vmem:[#allocation5 + $0x50] sm:$0xff] %vm486_vm1, %v2237_v3  ;;  %498 = vst.msk [vmem:[#allocation5 + $0x58] sm:$0xff] %vm486_vm1, %v2237_v3 }
  0x7c   : > { %499 = vst.msk [vmem:[#allocation5 + $0x60] sm:$0xff] %vm486_vm1, %v2237_v3  ;;  %500 = vst.msk [vmem:[#allocation5 + $0x68] sm:$0xff] %vm486_vm1, %v2237_v3 }
  0x7d   : > { %501 = vst.msk [vmem:[#allocation5 + $0x70] sm:$0xff] %vm486_vm1, %v2237_v3  ;;  %502 = vst.msk [vmem:[#allocation5 + $0x78] sm:$0xff] %vm486_vm1, %v2237_v3 }
  0xe4   : > { %v401_v10 = vpop.permute.xlu0 %400 }
 0x12c   : > { %v445_v11 = vpop.f32.mrf.mxu0 }
 0x12d   : > { %v446_v12 = vadd.f32 %v445_v11, %v401_v10 }
 0x12e   : > { %v1738_v13 = vpop.f32.mrf.mxu0 }
 0x12f   : > { %v451_v14 = vpack.c.bf16 %v446_v12, %v446_v12 }
 0x130   : > { %v448_v15 = vpop.f32.mrf.mxu0 }
 0x131   : > { %452 = vst [vmem:[#allocation2] sm:$0x3] %v451_v14 }
 0x132   : > { %v1739_v16 = vpop.f32.mrf.mxu0 }
 0x133 PF: > { %vm514_vm5 = vcmask 1043456   ;;  %v2241_v17 = vmov 0.0   ;;  %vm2242_vm6 = vmmov 0   ;;  %s3036_s27 = sld [smem:[#allocation27_spill]]  ;;  %vm510_vm7 = vcmask 64512   ;;  %v2632_v56 = vld [vmem:[#allocation3 + $0x10] sm:$0xff] }
 0x134   : > { %1740 = vmatprep.subr.bf16.mxu0 %v2241_v17  ;;  %v516_v18 = vsel %vm514_vm5, %v390_v2, 0  ;;  %1742 = vmatprep.mubr.msk.bf16.mxu0 %vm2242_vm6, %v2241_v17  ;;  %s3037_s7 = sld [smem:[#allocation26_spill]]  ;;  %v2243_v21 = vmov 0   ;;  %vm576_vm8 = vcmask 31744   ;;  %vm601_vm9 = vcmask 1041408   ;;  %v2637_v59 = vld [vmem:[#allocation3] sm:$0xff] }
 0x135   : > { %1741 = vmatpush3.bf16.msra.mxu0 %v516_v18  ;;  %1937 = vset.pattern.permute.xlu0 %v2243_v21  ;;  %vm1022_vm10 = vcmask 7168   ;;  %v2642_v62 = vld [vmem:[#allocation3 + $0x18] sm:$0xff]  ;;  %v703_v2 = vld [vmem:[#allocation3 + $0x8] sm:$0xff]  ;;  %v2651_v5 = vld [vmem:[#allocation3 + $0x30] sm:$0xff]  ;;  %p1696_p8 = scmp.ne.s32.totalorder %s2209_s11, 1 }
 0x136   : > { %1938 = vset.pattern.permute.xlu1 %v2243_v21  ;;  %v706_v8 = vld [vmem:[#allocation3 + $0x20] sm:$0xff]  ;;  %v2660_v10 = vld [vmem:[#allocation3 + $0x48] sm:$0xff]  ;;  %v2662_v12 = vld [vmem:[#allocation3 + $0x38] sm:$0xff]  ;;  %s3038_s3 = sld [smem:[#allocation29_spill]] (!%p1696_p8) }
 0x137   : > { %v2671_v17 = vld [vmem:[#allocation3 + $0x28] sm:$0xff]  ;;  %s3039_s23 = sld [smem:[#allocation28_spill]] (!%p1696_p8) }
 0x138   : > { %v559_v22 = vld [vmem:[#allocation2] sm:$0x3] }
 0x139   : > { %v504_v19 = vld [vmem:[%s3036_s27] sm:$0xff] }
 0x13a   : > { %v503_v20 = vld [vmem:[%s3037_s7] sm:$0xf]  ;;  %507 = vperm.xlu0 %1937, %v504_v19  }
 0x13b   : > { %1743 = vmatmul.mubr.msk.bf16.vlgmr.msra.gmra.mxu0 %vm510_vm7, %v503_v20  ;;  %v2675_v20 = vld [vmem:[#allocation3 + $0x40] sm:$0xff] }
 0x158   : > { %560 = vxpose.xlu0.c.b16.start.end [1/1] (short) %v559_v22, 128 }
 0x1b5   : > { %v508_v23 = vpop.permute.xlu0 %507 }
 0x1ba   : > { %v568_v24 = vpop.trf.xlu0 }
 0x1bb   : > { %1748 = vmatprep.mubr.msk.bf16.mxu1 %vm576_vm8, %v568_v24 }
 0x1be   : > { %v569_v26 = vpop.trf.xlu0 }
 0x1c2   : > { %v570_v31 = vpop.trf.xlu0 }
 0x1c6   : > { %v571_v35 = vpop.trf.xlu0 }
 0x1ca   : > { %v572_v36 = vpop.trf.xlu0 }
 0x1ce   : > { %v573_v37 = vpop.trf.xlu0 }
 0x1d2   : > { %v574_v38 = vpop.trf.xlu0 }
 0x1d6   : > { %v575_v39 = vpop.trf.xlu0 }
 0x1fb   : > { %v552_v25 = vpop.f32.mrf.mxu0 }
 0x1fc   : > { %v553_v27 = vadd.f32 %v552_v25, %v508_v23  ;;  %v712_v23 = vld [vmem:[#allocation3 + $0x50] sm:$0xff] }
 0x1fd   : > { %v1744_v28 = vpop.f32.mrf.mxu0 }
 0x1fe   : > { %v558_v29 = vpack.c.bf16 %v553_v27, %v553_v27  ;;  %v2685_v27 = vld [vmem:[#allocation3 + $0x58] sm:$0xff] }
 0x1ff   : > { %v555_v30 = vpop.f32.mrf.mxu0 }
 0x200   : > { %1802 = vmatprep.subr.msk.bf16.mxu1 %vm601_vm9, %v558_v29  ;;  %v603_v32 = vsel %vm601_vm9, %v558_v29, 0  ;;  %v1048_v33 = vrot.slane %v558_v29, 2 }
 0x201   : > { %v1745_v34 = vpop.f32.mrf.mxu0  ;;  %1747 = vmatpush3.bf16.msra.mxu1 %v603_v32 }
 0x202   : > { %1764 = vmatprep.subr.bf16.mxu0 %v1048_v33 }
 0x203   : > { %1765 = vmatpush3.bf16.xpose.msra.mxu0 %v1048_v33  ;;  %v2693_v33 = vld [vmem:[#allocation3 + $0x70] sm:$0xff] }
 0x204   : > { %1749 = vmatmul.mubr.msk.bf16.vlgmr.msra.gmra.mxu1 %vm576_vm8, %v569_v26 }
 0x205   : > { %1752 = vmatprep.mubr.msk.bf16.mxu1 %vm576_vm8, %v570_v31 }
 0x20c   : > { %1753 = vmatmul.mubr.msk.bf16.gmra.mxu1 %vm576_vm8, %v571_v35 }
 0x20d   : > { %1756 = vmatprep.mubr.msk.bf16.mxu1 %vm576_vm8, %v572_v36 }
 0x214   : > { %1757 = vmatmul.mubr.msk.bf16.gmra.mxu1 %vm576_vm8, %v573_v37 }
 0x215   : > { %1760 = vmatprep.mubr.msk.bf16.mxu1 %vm576_vm8, %v574_v38 }
 0x21c   : > { %1761 = vmatmul.mubr.msk.bf16.gmra.mxu1 %vm576_vm8, %v575_v39 }
 0x2c4   : > { %v2584_v40 = vpop.f32.mrf.mxu1 }
 0x2c5   : > { %722 = vmax.xlane.f32.xlu1 %v2584_v40 }
 0x2c6   : > { %v2587_v41 = vpop.f32.mrf.mxu1 }
 0x2c8   : > { %v2589_v42 = vpop.f32.mrf.mxu1 }
 0x2c9   : > { %718 = vmax.xlane.f32.xlu1 %v2587_v41 }
 0x2ca   : > { %v2592_v43 = vpop.f32.mrf.mxu1 }
 0x2cc   : > { %v2594_v44 = vpop.f32.mrf.mxu1 }
 0x2cd   : > { %724 = vmax.xlane.f32.xlu1 %v2589_v42 }
 0x2ce   : > { %v2597_v45 = vpop.f32.mrf.mxu1 }
 0x2d0   : > { %v2599_v46 = vpop.f32.mrf.mxu1 }
 0x2d1   : > { %720 = vmax.xlane.f32.xlu1 %v2592_v43 }
 0x2d2   : > { %v2602_v47 = vpop.f32.mrf.mxu1 }
 0x2d4   : > { %v2604_v48 = vpop.f32.mrf.mxu1 }
 0x2d5   : > { %730 = vmax.xlane.f32.xlu1 %v2594_v44 }
 0x2d6   : > { %v2607_v49 = vpop.f32.mrf.mxu1 }
 0x2d8   : > { %v2609_v50 = vpop.f32.mrf.mxu1 }
 0x2d9   : > { %726 = vmax.xlane.f32.xlu1 %v2597_v45 }
 0x2da   : > { %v2612_v51 = vpop.f32.mrf.mxu1 }
 0x2db   : > { %736 = vmax.xlane.f32.xlu0 %v2612_v51 }
 0x2dc   : > { %v2619_v52 = vpop.f32.mrf.mxu1 }
 0x2dd   : > { %732 = vmax.xlane.f32.xlu1 %v2599_v46 }
 0x2de   : > { %v2622_v53 = vpop.f32.mrf.mxu1 }
 0x2e0   : > { %v2625_v54 = vpop.f32.mrf.mxu1 }
 0x2e1   : > { %728 = vmax.xlane.f32.xlu1 %v2602_v47 }
 0x2e2   : > { %v2628_v55 = vpop.f32.mrf.mxu1 }
 0x2e5   : > { %734 = vmax.xlane.f32.xlu1 %v2607_v49 }
 0x2e9   : > { %738 = vmax.xlane.f32.xlu1 %v2604_v48 }
 0x2ed   : > { %740 = vmax.xlane.f32.xlu1 %v2609_v50 }
 0x2f1   : > { %746 = vmax.xlane.f32.xlu1 %v2619_v52 }
 0x2f5   : > { %742 = vmax.xlane.f32.xlu1 %v2622_v53 }
 0x2f9   : > { %744 = vmax.xlane.f32.xlu1 %v2628_v55 }
 0x2fd   : > { %748 = vmax.xlane.f32.xlu1 %v2625_v54 }
 0x34e   : > { %v723_v57 = vpop.xlane.xlu1 %722 }
 0x34f   : > { %v2635_v58 = vmax.f32 %v2632_v56, %v723_v57 }
 0x351   : > { %1293 = vst.msk [vmem:[#allocation3 + $0x10] sm:$0xff] %vm1022_vm10, %v2635_v58  ;;  %v768_v28 = vsub.f32 %v2632_v56, %v2635_v58  ;;  %v714_v56 = vld [vmem:[#allocation3 + $0x60] sm:$0xff] }
 0x352   : > { %v719_v60 = vpop.xlane.xlu1 %718 }
 0x353   : > { %v750_v61 = vmax.f32 %v2637_v59, %v719_v60  ;;  %v786_v34 = vmul.f32 1.442695, %v768_v28 }
 0x355   : > { %1291 = vst.msk [vmem:[#allocation3] sm:$0xff] %vm1022_vm10, %v750_v61  ;;  %816 = vperm.xlu1 %1938, %v750_v61   ;;  %v766_v30 = vsub.f32 %v2637_v59, %v750_v61 }
 0x356   : > { %v725_v63 = vpop.xlane.xlu1 %724 }
 0x357   : > { %v2646_v1 = vmax.f32 %v2642_v62, %v725_v63  ;;  %v782_v37 = vmul.f32 1.442695, %v766_v30 }
 0x359   : > { %1294 = vst.msk [vmem:[#allocation3 + $0x18] sm:$0xff] %vm1022_vm10, %v2646_v1  ;;  %826 = vperm.xlu1 %1938, %v2635_v58   ;;  %v769_v35 = vsub.f32 %v2642_v62, %v2646_v1 }
 0x35a   : > { %v721_v3 = vpop.xlane.xlu1 %720 }
 0x35b   : > { %v751_v4 = vmax.f32 %v703_v2, %v721_v3  ;;  %v788_v58 = vmul.f32 1.442695, %v769_v35 }
 0x35d   : > { %1292 = vst.msk [vmem:[#allocation3 + $0x8] sm:$0xff] %vm1022_vm10, %v751_v4  ;;  %821 = vperm.xlu0 %1937, %v751_v4   ;;  %831 = vperm.xlu1 %1938, %v2646_v1   ;;  %v767_v25 = vsub.f32 %v703_v2, %v751_v4  ;;  %v715_v1 = vld [vmem:[#allocation3 + $0x68] sm:$0xff] }
 0x35e   : > { %v731_v6 = vpop.xlane.xlu1 %730 }
 0x35f   : > { %v2656_v7 = vmax.f32 %v2651_v5, %v731_v6  ;;  %v784_v31 = vmul.f32 1.442695, %v767_v25 }
 0x361   : > { %1297 = vst.msk [vmem:[#allocation3 + $0x30] sm:$0xff] %vm1022_vm10, %v2656_v7  ;;  %1939 = vpow2.f32 %v784_v31  ;;  %v772_v59 = vsub.f32 %v2651_v5, %v2656_v7  ;;  %v2710_v5 = vld [vmem:[#allocation3 + $0x78] sm:$0xff] }
 0x362   : > { %v727_v9 = vpop.xlane.xlu1 %726  ;;  %1941 = vpow2.f32 %v786_v34 }
 0x363   : > { %v754_v11 = vmax.f32 %v706_v8, %v727_v9  ;;  %1943 = vpow2.f32 %v782_v37  ;;  %v794_v2 = vmul.f32 1.442695, %v772_v59 }
 0x364   : > { %v737_v13 = vpop.xlane.xlu0 %736  ;;  %1945 = vpow2.f32 %v788_v58 }
 0x365   : > { %1295 = vst.msk [vmem:[#allocation3 + $0x20] sm:$0xff] %vm1022_vm10, %v754_v11  ;;  %836 = vperm.xlu1 %1938, %v754_v11   ;;  %v2666_v14 = vmax.f32 %v2660_v10, %v737_v13  ;;  %v770_v38 = vsub.f32 %v706_v8, %v754_v11 }
 0x366   : > { %v733_v15 = vpop.xlane.xlu1 %732 }
 0x367   : > { %v757_v16 = vmax.f32 %v2662_v12, %v733_v15  ;;  %1300 = vst.msk [vmem:[#allocation3 + $0x48] sm:$0xff] %vm1022_vm10, %v2666_v14  ;;  %v790_v61 = vmul.f32 1.442695, %v770_v38 }
 0x369   : > { %1298 = vst.msk [vmem:[#allocation3 + $0x38] sm:$0xff] %vm1022_vm10, %v757_v16  ;;  %851 = vperm.xlu0 %1937, %v757_v16   ;;  %v773_v62 = vsub.f32 %v2662_v12, %v757_v16  ;;  %1947 = vpow2.f32 %v790_v61 }
 0x36a   : > { %v729_v18 = vpop.xlane.xlu1 %728  ;;  %1949 = vpow2.f32 %v794_v2 }
 0x36b   : > { %v755_v19 = vmax.f32 %v2671_v17, %v729_v18  ;;  %v796_v6 = vmul.f32 1.442695, %v773_v62 }
 0x36d   : > { %1296 = vst.msk [vmem:[#allocation3 + $0x28] sm:$0xff] %vm1022_vm10, %v755_v19  ;;  %861 = vperm.xlu0 %1937, %v2666_v14   ;;  %841 = vperm.xlu1 %1938, %v755_v19   ;;  %v771_v3 = vsub.f32 %v2671_v17, %v755_v19  ;;  %1951 = vpow2.f32 %v796_v6  ;;  %v775_v19 = vsub.f32 %v2660_v10, %v2666_v14 }
 0x36e   : > { %v735_v21 = vpop.xlane.xlu1 %734  ;;  %v2720_v17 = vpop.eup %1939 }
 0x36f   : > { %v2680_v22 = vmax.f32 %v2675_v20, %v735_v21  ;;  %v2730_v21 = vpop.eup %1941  ;;  %v800_v25 = vmul.f32 1.442695, %v775_v19 }
 0x371   : > { %1299 = vst.msk [vmem:[#allocation3 + $0x40] sm:$0xff] %vm1022_vm10, %v2680_v22  ;;  %846 = vperm.xlu1 %1938, %v2656_v7   ;;  %v792_v7 = vmul.f32 1.442695, %v771_v3  ;;  %v774_v11 = vsub.f32 %v2675_v20, %v2680_v22 }
 0x372   : > { %v739_v24 = vpop.xlane.xlu1 %738 }
 0x373   : > { %v760_v26 = vmax.f32 %v712_v23, %v739_v24  ;;  %1953 = vpow2.f32 %v792_v7  ;;  %v798_v20 = vmul.f32 1.442695, %v774_v11  ;;  %v2732_v24 = vpop.eup %1943 }
 0x375   : > { %1301 = vst.msk [vmem:[#allocation3 + $0x50] sm:$0xff] %vm1022_vm10, %v760_v26  ;;  %856 = vperm.xlu1 %1938, %v2680_v22   ;;  %v776_v8 = vsub.f32 %v712_v23, %v760_v26 }
 0x376   : > { %v741_v29 = vpop.xlane.xlu1 %740 }
 0x377   : > { %v761_v32 = vmax.f32 %v2685_v27, %v741_v29  ;;  %v802_v13 = vmul.f32 1.442695, %v776_v8 }
 0x379   : > { %1302 = vst.msk [vmem:[#allocation3 + $0x58] sm:$0xff] %vm1022_vm10, %v761_v32  ;;  %871 = vperm.xlu0 %1937, %v761_v32   ;;  %866 = vperm.xlu1 %1938, %v760_v26   ;;  %v777_v15 = vsub.f32 %v2685_v27, %v761_v32  ;;  %1955 = vpow2.f32 %v802_v13  ;;  %v2736_v26 = vpop.eup %1945 }
 0x37a   : > { %v747_v36 = vpop.xlane.xlu1 %746  ;;  %1957 = vpow2.f32 %v798_v20  ;;  %v2738_v10 = vpop.eup %1947 }
 0x37b   : > { %v2699_v39 = vmax.f32 %v2693_v33, %v747_v36  ;;  %v804_v22 = vmul.f32 1.442695, %v777_v15  ;;  %v2742_v14 = vpop.eup %1949 }
 0x37c   : > { %v2744_v30 = vpop.eup %1951 }
 0x37d   : > { %v780_v57 = vsub.f32 %v2693_v33, %v2699_v39  ;;  %1305 = vst.msk [vmem:[#allocation3 + $0x70] sm:$0xff] %vm1022_vm10, %v2699_v39  ;;  %1959 = vpow2.f32 %v804_v22 }
 0x37e   : > { %v743_v60 = vpop.xlane.xlu1 %742  ;;  %1961 = vpow2.f32 %v800_v25 }
 0x37f   : > { %v762_v63 = vmax.f32 %v714_v56, %v743_v60 }
 0x380   : > { %v2748_v31 = vpop.eup %1953 }
 0x381   : > { %1303 = vst.msk [vmem:[#allocation3 + $0x60] sm:$0xff] %vm1022_vm10, %v762_v63  ;;  %876 = vperm.xlu1 %1938, %v762_v63   ;;  %v778_v23 = vsub.f32 %v714_v56, %v762_v63 }
 0x382   : > { %v745_v4 = vpop.xlane.xlu1 %744 }
 0x383   : > { %v763_v9 = vmax.f32 %v715_v1, %v745_v4  ;;  %v806_v27 = vmul.f32 1.442695, %v778_v23 }
 0x385   : > { %1304 = vst.msk [vmem:[#allocation3 + $0x68] sm:$0xff] %vm1022_vm10, %v763_v9  ;;  %886 = vperm.xlu1 %1938, %v2699_v39   ;;  %881 = vperm.xlu0 %1937, %v763_v9   ;;  %v779_v28 = vsub.f32 %v715_v1, %v763_v9  ;;  %1963 = vpow2.f32 %v806_v27 }
 0x386   : > { %v749_v12 = vpop.xlane.xlu1 %748  ;;  %v2750_v32 = vpop.eup %1955 }
 0x387   : > { %v2718_v16 = vmax.f32 %v2710_v5, %v749_v12  ;;  %v808_v29 = vmul.f32 1.442695, %v779_v28  ;;  %v2754_v34 = vpop.eup %1957 }
 0x389   : > { %v781_v18 = vsub.f32 %v2710_v5, %v2718_v16  ;;  %1306 = vst.msk [vmem:[#allocation3 + $0x78] sm:$0xff] %vm1022_vm10, %v2718_v16  ;;  %1170 = vperm.xlu1 %1938, %v2720_v17   ;;  %891 = vperm.xlu0 %1937, %v2718_v16   ;;  %1965 = vpow2.f32 %v808_v29 }
 0x38a   : > { %v2756_v35 = vpop.eup %1959 }
 0x38b   : > { %v2760_v36 = vpop.eup %1961 }
 0x38d   : > { %1175 = vperm.xlu1 %1938, %v2730_v21   ;;  %1165 = vperm.xlu0 %1937, %v2732_v24  }
 0x391   : > { %1185 = vperm.xlu1 %1938, %v2738_v10   ;;  %1180 = vperm.xlu0 %1937, %v2736_v26  }
 0x392   : > { %v2762_v37 = vpop.eup %1963 }
 0x395   : > { %1195 = vperm.xlu1 %1938, %v2742_v14   ;;  %1200 = vperm.xlu0 %1937, %v2744_v30  }
 0x396   : > { %v2766_v38 = vpop.eup %1965 }
 0x399   : > { %1215 = vperm.xlu1 %1938, %v2750_v32   ;;  %1190 = vperm.xlu0 %1937, %v2748_v31  }
 0x39d   : > { %1205 = vperm.xlu1 %1938, %v2754_v34   ;;  %1220 = vperm.xlu0 %1937, %v2756_v35  }
 0x3a1   : > { %1225 = vperm.xlu1 %1938, %v2762_v37   ;;  %1210 = vperm.xlu0 %1937, %v2760_v36  }
 0x3a5   : > { %1230 = vperm.xlu0 %1937, %v2766_v38  }
 0x3d0   : > { %v817_v56 = vpop.permute.xlu1 %816 }
 0x3d1   : > { %v894_v58 = vsub.f32 %v2587_v41, %v817_v56 }
 0x3d3   : > { %v910_v59 = vmul.f32 1.442695, %v894_v58 }
 0x3d4   : > { %v827_v60 = vpop.permute.xlu1 %826 }
 0x3d5   : > { %1967 = vpow2.f32 %v910_v59  ;;  %v896_v61 = vsub.f32 %v2584_v40, %v827_v60 }
 0x3d7   : > { %v914_v62 = vmul.f32 1.442695, %v896_v61 }
 0x3d8   : > { %v822_v63 = vpop.permute.xlu0 %821  ;;  %v832_v1 = vpop.permute.xlu1 %831 }
 0x3d9   : > { %1969 = vpow2.f32 %v914_v62  ;;  %v895_v2 = vsub.f32 %v2592_v43, %v822_v63  ;;  %v897_v3 = vsub.f32 %v2589_v42, %v832_v1 }
 0x3db   : > { %v912_v4 = vmul.f32 1.442695, %v895_v2  ;;  %v916_v6 = vmul.f32 1.442695, %v897_v3 }
 0x3dd   : > { %1971 = vpow2.f32 %v912_v4 }
 0x3de   : > { %1973 = vpow2.f32 %v916_v6 }
 0x3e0   : > { %v837_v9 = vpop.permute.xlu1 %836 }
 0x3e1   : > { %v898_v7 = vsub.f32 %v2597_v45, %v837_v9 }
 0x3e2   : > { %v1968_v8 = vpop.eup %1967 }
 0x3e3   : > { %974 = vadd.xlane.f32.xlu1 %v1968_v8  ;;  %v918_v15 = vmul.f32 1.442695, %v898_v7 }
 0x3e4   : > { %v852_v41 = vpop.permute.xlu0 %851 }
 0x3e5   : > { %v901_v40 = vsub.f32 %v2599_v46, %v852_v41 }
 0x3e6   : > { %v1970_v11 = vpop.eup %1969 }
 0x3e7   : > { %v924_v12 = vmul.f32 1.442695, %v901_v40  ;;  %978 = vadd.xlane.f32.xlu0 %v1970_v11 }
 0x3e8   : > { %v842_v13 = vpop.permute.xlu1 %841  ;;  %v862_v43 = vpop.permute.xlu0 %861 }
 0x3e9   : > { %1975 = vpow2.f32 %v924_v12  ;;  %v899_v42 = vsub.f32 %v2602_v47, %v842_v13  ;;  %v903_v25 = vsub.f32 %v2612_v51, %v862_v43 }
 0x3ea   : > { %v1972_v19 = vpop.eup %1971  ;;  %1977 = vpow2.f32 %v918_v15 }
 0x3eb   : > { %v1974_v20 = vpop.eup %1973  ;;  %v920_v22 = vmul.f32 1.442695, %v899_v42  ;;  %976 = vadd.xlane.f32.xlu0 %v1972_v19  ;;  %v1039_v23 = vpack.c.bf16 %v1972_v19, %v1968_v8  ;;  %v928_v29 = vmul.f32 1.442695, %v903_v25 }
 0x3ec   : > { %980 = vadd.xlane.f32.xlu1 %v1974_v20  ;;  %v847_v45 = vpop.permute.xlu1 %846  ;;  %v1040_v27 = vpack.c.bf16 %v1974_v20, %v1970_v11 }
 0x3ed   : > { %v900_v46 = vsub.f32 %v2594_v44, %v847_v45  ;;  %1766 = vmatprep.mubr.bf16.mxu0 %v1039_v23  ;;  %1979 = vpow2.f32 %v920_v22 }
 0x3ee   : > { %1767 = vmatmul.mubr.bf16.vlgmr.msra.gmra.mxu0 %v1040_v27  ;;  %v810_v27 = vmul.f32 1.442695, %v780_v57 }
 0x3ef   : > { %v922_v28 = vmul.f32 1.442695, %v900_v46  ;;  %v812_v46 = vmul.f32 1.442695, %v781_v18 }
 0x3f0   : > { %v857_v56 = vpop.permute.xlu1 %856 }
 0x3f1   : > { %1981 = vpow2.f32 %v922_v28  ;;  %v902_v47 = vsub.f32 %v2607_v49, %v857_v56 }
 0x3f2   : > { %1983 = vpow2.f32 %v928_v29 }
 0x3f3   : > { %v926_v58 = vmul.f32 1.442695, %v902_v47 }
 0x3f4   : > { %v872_v59 = vpop.permute.xlu0 %871  ;;  %v867_v60 = vpop.permute.xlu1 %866 }
 0x3f5   : > { %1985 = vpow2.f32 %v926_v58  ;;  %v905_v51 = vsub.f32 %v2609_v50, %v872_v59  ;;  %v904_v61 = vsub.f32 %v2604_v48, %v867_v60 }
 0x3f6   : > { %v1976_v62 = vpop.eup %1975 }
 0x3f7   : > { %v932_v44 = vmul.f32 1.442695, %v905_v51  ;;  %v930_v63 = vmul.f32 1.442695, %v904_v61  ;;  %988 = vadd.xlane.f32.xlu1 %v1976_v62  ;;  %v1978_v1 = vpop.eup %1977 }
 0x3f9   : > { %1987 = vpow2.f32 %v932_v44 }
 0x3fa   : > { %1989 = vpow2.f32 %v930_v63  ;;  %v1980_v2 = vpop.eup %1979 }
 0x3fb   : > { %984 = vadd.xlane.f32.xlu1 %v1980_v2  ;;  %v1041_v49 = vpack.c.bf16 %v1980_v2, %v1978_v1  ;;  %v944_v2 = vld [vmem:[#allocation4 + $0x10] sm:$0xff] }
 0x3fc   : > { %v877_v3 = vpop.permute.xlu1 %876 }
 0x3fd   : > { %v906_v4 = vsub.f32 %v2622_v53, %v877_v3  ;;  %1770 = vmatprep.mubr.bf16.mxu0 %v1041_v49  ;;  %v960_v49 = vmul.f32 %v2730_v21, %v944_v2 }
 0x3fe   : > { %v1982_v6 = vpop.eup %1981 }
 0x3ff   : > { %986 = vadd.xlane.f32.xlu0 %v1982_v6  ;;  %v1042_v8 = vpack.c.bf16 %v1976_v62, %v1982_v6  ;;  %v934_v50 = vmul.f32 1.442695, %v906_v4  ;;  %v1984_v41 = vpop.eup %1983  ;;  %v942_v62 = vld [vmem:[#allocation4] sm:$0xff]  ;;  %v943_v6 = vld [vmem:[#allocation4 + $0x8] sm:$0xff] }
 0x400   : > { %v882_v9 = vpop.permute.xlu0 %881  ;;  %v887_v48 = vpop.permute.xlu1 %886  ;;  %v958_v44 = vmul.f32 %v2732_v24, %v942_v62  ;;  %v950_v62 = vld [vmem:[#allocation4 + $0x40] sm:$0xff] }
 0x401   : > { %v907_v7 = vsub.f32 %v2628_v55, %v882_v9  ;;  %v908_v40 = vsub.f32 %v2619_v52, %v887_v48  ;;  %1771 = vmatmul.mubr.bf16.gmra.mxu0 %v1042_v8  ;;  %1991 = vpow2.f32 %v934_v50  ;;  %v945_v50 = vld [vmem:[#allocation4 + $0x18] sm:$0xff]  ;;  %v959_v9 = vmul.f32 %v2720_v17, %v943_v6 }
 0x402   : > { %v1986_v11 = vpop.eup %1985  ;;  %v961_v24 = vmul.f32 %v2736_v26, %v945_v50  ;;  %v957_v6 = vld [vmem:[#allocation4 + $0x78] sm:$0xff]  ;;  %v954_v50 = vld [vmem:[#allocation4 + $0x60] sm:$0xff] }
 0x403   : > { %v936_v12 = vmul.f32 1.442695, %v907_v7  ;;  %v938_v13 = vmul.f32 1.442695, %v908_v40  ;;  %982 = vadd.xlane.f32.xlu0 %v1978_v1  ;;  %v1043_v15 = vpack.c.bf16 %v1984_v41, %v1986_v11 }
 0x404   : > { %v892_v53 = vpop.permute.xlu0 %891  ;;  %v2797_v56 = vpop.permute.xlu1 %1170 }
 0x405   : > { %1993 = vpow2.f32 %v936_v12  ;;  %v909_v43 = vsub.f32 %v2625_v54, %v892_v53  ;;  %1774 = vmatprep.mubr.bf16.mxu0 %v1043_v15  ;;  %v947_v15 = vld [vmem:[#allocation4 + $0x28] sm:$0xff]  ;;  %v948_v53 = vld [vmem:[#allocation4 + $0x30] sm:$0xff] }
 0x406   : > { %v1988_v42 = vpop.eup %1987  ;;  %1995 = vpow2.f32 %v938_v13  ;;  %v963_v17 = vmul.f32 %v2748_v31, %v947_v15 }
 0x407   : > { %v1990_v19 = vpop.eup %1989  ;;  %v940_v20 = vmul.f32 1.442695, %v909_v43  ;;  %996 = vadd.xlane.f32.xlu1 %v1988_v42 }
 0x408   : > { %994 = vadd.xlane.f32.xlu0 %v1990_v19  ;;  %v1044_v55 = vpack.c.bf16 %v1988_v42, %v1990_v19  ;;  %v2799_v47 = vpop.permute.xlu0 %1165  ;;  %v2801_v33 = vpop.permute.xlu1 %1175  ;;  %v964_v42 = vmul.f32 %v2742_v14, %v948_v53 }
 0x409   : > { %1997 = vpow2.f32 %v940_v20  ;;  %v946_v20 = vld [vmem:[#allocation4 + $0x20] sm:$0xff] }
 0x40a   : > { %1775 = vmatmul.mubr.bf16.gmra.mxu0 %v1044_v55  ;;  %1999 = vpow2.f32 %v810_v27 }
 0x40b   : > { %992 = vadd.xlane.f32.xlu1 %v1984_v41  ;;  %2001 = vpow2.f32 %v812_v46 }
 0x40c   : > { %990 = vadd.xlane.f32.xlu0 %v1986_v11  ;;  %v2803_v39 = vpop.permute.xlu0 %1180  ;;  %v2805_v57 = vpop.permute.xlu1 %1185  ;;  %v949_v11 = vld [vmem:[#allocation4 + $0x38] sm:$0xff] }
 0x40d   : > { %v965_v21 = vmul.f32 %v2744_v30, %v949_v11  ;;  %v962_v30 = vmul.f32 %v2738_v10, %v946_v20 }
 0x40e   : > { %v1992_v52 = vpop.eup %1991 }
 0x410   : > { %v2807_v5 = vpop.permute.xlu0 %1200  ;;  %v2809_v16 = vpop.permute.xlu1 %1195 }
 0x412   : > { %v1994_v22 = vpop.eup %1993 }
 0x413   : > { %v1996_v23 = vpop.eup %1995  ;;  %v1045_v25 = vpack.c.bf16 %v1994_v22, %v1992_v52 }
 0x414   : > { %1002 = vadd.xlane.f32.xlu0 %v1996_v23  ;;  %v2811_v18 = vpop.permute.xlu0 %1190  ;;  %v2813_v58 = vpop.permute.xlu1 %1215 }
 0x415   : > { %1778 = vmatprep.mubr.bf16.mxu0 %v1045_v25  ;;  %v952_v25 = vld [vmem:[#allocation4 + $0x50] sm:$0xff] }
 0x416   : > { %v1998_v45 = vpop.eup %1997 }
 0x417   : > { %1004 = vadd.xlane.f32.xlu1 %v1998_v45  ;;  %v1046_v54 = vpack.c.bf16 %v1998_v45, %v1996_v23  ;;  %v2791_v28 = vpop.eup %1999  ;;  %v968_v45 = vmul.f32 %v2750_v32, %v952_v25  ;;  %v956_v32 = vld [vmem:[#allocation4 + $0x70] sm:$0xff] }
 0x418   : > { %998 = vadd.xlane.f32.xlu0 %v1992_v52  ;;  %v2794_v29 = vpop.eup %2001  ;;  %v2815_v59 = vpop.permute.xlu0 %1220 }
 0x419   : > { %1779 = vmatmul.mubr.bf16.gmra.mxu0 %v1046_v54  ;;  %v2817_v60 = vpop.permute.xlu1 %1205  ;;  %v951_v54 = vld [vmem:[#allocation4 + $0x48] sm:$0xff] }
 0x41a   : > { %v967_v10 = vmul.f32 %v2760_v36, %v951_v54  ;;  %v973_v36 = vmul.f32 %v2794_v29, %v957_v6 }
 0x41b   : > { %1000 = vadd.xlane.f32.xlu1 %v1994_v22  ;;  %v953_v22 = vld [vmem:[#allocation4 + $0x58] sm:$0xff] }
 0x41c   : > { %v2819_v51 = vpop.permute.xlu0 %1210  ;;  %v969_v31 = vmul.f32 %v2756_v35, %v953_v22 }
 0x41d   : > { %v2821_v61 = vpop.permute.xlu1 %1225 }
 0x420   : > { %v2824_v63 = vpop.permute.xlu0 %1230 }
 0x42c   : > { %1235 = vperm.xlu1 %1938, %v2791_v28  }
 0x42e   : > { %1240 = vperm.xlu0 %1937, %v2794_v29   ;;  %v1149_v29 = vld [vmem:[#allocation5 + $0x10] sm:$0xff] }
 0x46c   : > { %v975_v1 = vpop.xlane.xlu1 %974 }
 0x46d   : > { %v1006_v3 = vadd.f32 %v975_v1, %v958_v44  ;;  %v966_v1 = vmul.f32 %v2754_v34, %v950_v62  ;;  %v970_v34 = vmul.f32 %v2762_v37, %v954_v50  ;;  %v1150_v37 = vld [vmem:[#allocation5 + $0x18] sm:$0xff]  ;;  %v1157_v62 = vld [vmem:[#allocation5 + $0x50] sm:$0xff] }
 0x46f   : > { %1023 = vst.msk [vmem:[#allocation4] sm:$0xff] %vm1022_vm10, %v1006_v3 }
 0x470   : > { %v979_v4 = vpop.xlane.xlu0 %978 }
 0x471   : > { %v1008_v8 = vadd.f32 %v979_v4, %v960_v49  ;;  %v972_v4 = vmul.f32 %v2791_v28, %v956_v32 }
 0x473   : > { %1025 = vst.msk [vmem:[#allocation4 + $0x10] sm:$0xff] %vm1022_vm10, %v1008_v8 }
 0x474   : > { %v977_v48 = vpop.xlane.xlu0 %976 }
 0x475   : > { %v1007_v41 = vadd.f32 %v977_v48, %v959_v9  ;;  %v981_v7 = vpop.xlane.xlu1 %980 }
 0x476   : > { %v1009_v40 = vadd.f32 %v981_v7, %v961_v24  ;;  %v955_v24 = vld [vmem:[#allocation4 + $0x68] sm:$0xff] }
 0x477   : > { %1024 = vst.msk [vmem:[#allocation4 + $0x8] sm:$0xff] %vm1022_vm10, %v1007_v41  ;;  %v971_v11 = vmul.f32 %v2766_v38, %v955_v24 }
 0x478   : > { %1026 = vst.msk [vmem:[#allocation4 + $0x18] sm:$0xff] %vm1022_vm10, %v1009_v40 }
 0x480   : > { %v989_v12 = vpop.xlane.xlu1 %988 }
 0x481   : > { %v1013_v13 = vadd.f32 %v989_v12, %v965_v21  ;;  %v1147_v12 = vld [vmem:[#allocation5] sm:$0xff] }
 0x483   : > { %1030 = vst.msk [vmem:[#allocation4 + $0x38] sm:$0xff] %vm1022_vm10, %v1013_v13  ;;  %v1245_v13 = vmul.f32 %v2801_v33, %v1149_v29 }
 0x484   : > { %v985_v43 = vpop.xlane.xlu1 %984 }
 0x485   : > { %v1011_v26 = vadd.f32 %v985_v43, %v963_v17  ;;  %v1243_v17 = vmul.f32 %v2799_v47, %v1147_v12  ;;  %v1148_v43 = vld [vmem:[#allocation5 + $0x8] sm:$0xff]  ;;  %v1153_v47 = vld [vmem:[#allocation5 + $0x30] sm:$0xff] }
 0x486   : > { %v1244_v20 = vmul.f32 %v2797_v56, %v1148_v43  ;;  %v1249_v22 = vmul.f32 %v2809_v16, %v1153_v47 }
 0x487   : > { %1028 = vst.msk [vmem:[#allocation4 + $0x28] sm:$0xff] %vm1022_vm10, %v1011_v26 }
 0x488   : > { %v987_v19 = vpop.xlane.xlu0 %986 }
 0x489   : > { %v1012_v55 = vadd.f32 %v987_v19, %v964_v42  ;;  %v1246_v42 = vmul.f32 %v2803_v39, %v1150_v37  ;;  %v1154_v39 = vld [vmem:[#allocation5 + $0x38] sm:$0xff] }
 0x48b   : > { %1029 = vst.msk [vmem:[#allocation4 + $0x30] sm:$0xff] %vm1022_vm10, %v1012_v55 }
 0x48c   : > { %v983_v52 = vpop.xlane.xlu0 %982 }
 0x48d   : > { %v1010_v23 = vadd.f32 %v983_v52, %v962_v30  ;;  %v1151_v52 = vld [vmem:[#allocation5 + $0x20] sm:$0xff] }
 0x48e   : > { %v1247_v25 = vmul.f32 %v2805_v57, %v1151_v52 }
 0x48f   : > { %1027 = vst.msk [vmem:[#allocation4 + $0x20] sm:$0xff] %vm1022_vm10, %v1010_v23 }
 0x490   : > { %v997_v14 = vpop.xlane.xlu1 %996 }
 0x491   : > { %v995_v27 = vpop.xlane.xlu0 %994  ;;  %v1017_v46 = vadd.f32 %v997_v14, %v969_v31  ;;  %v1250_v14 = vmul.f32 %v2807_v5, %v1154_v39 }
 0x492   : > { %v1016_v44 = vadd.f32 %v995_v27, %v968_v45  ;;  %v1152_v45 = vld [vmem:[#allocation5 + $0x28] sm:$0xff] }
 0x493   : > { %1034 = vst.msk [vmem:[#allocation4 + $0x58] sm:$0xff] %vm1022_vm10, %v1017_v46  ;;  %v1248_v46 = vmul.f32 %v2811_v18, %v1152_v45 }
 0x494   : > { %1033 = vst.msk [vmem:[#allocation4 + $0x50] sm:$0xff] %vm1022_vm10, %v1016_v44  ;;  %v993_v2 = vpop.xlane.xlu1 %992 }
 0x495   : > { %v991_v3 = vpop.xlane.xlu0 %990  ;;  %v1015_v49 = vadd.f32 %v993_v2, %v967_v10  ;;  %v1155_v10 = vld [vmem:[#allocation5 + $0x40] sm:$0xff]  ;;  %v1158_v2 = vld [vmem:[#allocation5 + $0x58] sm:$0xff] }
 0x496   : > { %v1014_v35 = vadd.f32 %v991_v3, %v966_v1  ;;  %v1253_v1 = vmul.f32 %v2813_v58, %v1157_v62  ;;  %v1251_v3 = vmul.f32 %v2817_v60, %v1155_v10  ;;  %v1254_v32 = vmul.f32 %v2815_v59, %v1158_v2  ;;  %v1161_v60 = vld [vmem:[#allocation5 + $0x70] sm:$0xff]  ;;  %v1162_v59 = vld [vmem:[#allocation5 + $0x78] sm:$0xff] }
 0x497   : > { %1032 = vst.msk [vmem:[#allocation4 + $0x48] sm:$0xff] %vm1022_vm10, %v1015_v49 }
 0x498   : > { %1031 = vst.msk [vmem:[#allocation4 + $0x40] sm:$0xff] %vm1022_vm10, %v1014_v35  ;;  %v1156_v35 = vld [vmem:[#allocation5 + $0x48] sm:$0xff] }
 0x49d   : > { %v1003_v8 = vpop.xlane.xlu0 %1002 }
 0x49e   : > { %v1020_v9 = vadd.f32 %v1003_v8, %v972_v4  ;;  %v1252_v8 = vmul.f32 %v2819_v51, %v1156_v35  ;;  %v1160_v51 = vld [vmem:[#allocation5 + $0x68] sm:$0xff] }
 0x49f   : > { %v1256_v12 = vmul.f32 %v2824_v63, %v1160_v51 }
 0x4a0   : > { %1037 = vst.msk [vmem:[#allocation4 + $0x70] sm:$0xff] %vm1022_vm10, %v1020_v9  ;;  %v1005_v48 = vpop.xlane.xlu1 %1004 }
 0x4a1   : > { %v999_v41 = vpop.xlane.xlu0 %998  ;;  %v1021_v7 = vadd.f32 %v1005_v48, %v973_v36 }
 0x4a2   : > { %v1018_v40 = vadd.f32 %v999_v41, %v970_v34  ;;  %v1159_v34 = vld [vmem:[#allocation5 + $0x60] sm:$0xff] }
 0x4a3   : > { %1038 = vst.msk [vmem:[#allocation4 + $0x78] sm:$0xff] %vm1022_vm10, %v1021_v7  ;;  %v1255_v7 = vmul.f32 %v2821_v61, %v1159_v34 }
 0x4a4   : > { %1035 = vst.msk [vmem:[#allocation4 + $0x60] sm:$0xff] %vm1022_vm10, %v1018_v40  ;;  %v1001_v28 = vpop.xlane.xlu1 %1000 }
 0x4a5   : > { %v1019_v21 = vadd.f32 %v1001_v28, %v971_v11 }
 0x4a7   : > { %1036 = vst.msk [vmem:[#allocation4 + $0x68] sm:$0xff] %vm1022_vm10, %v1019_v21 }
 0x4a8   : > { %v1236_v36 = vpop.permute.xlu1 %1235 }
 0x4a9   : > { %v1257_v48 = vmul.f32 %v1236_v36, %v1161_v60  ;;  %v1241_v24 = vpop.permute.xlu0 %1240 }
 0x4aa   : > { %v1258_v28 = vmul.f32 %v1241_v24, %v1162_v59 }
 0x4ae   : > { %v1768_v15 = vpop.f32.mrf.mxu0 }
 0x4af   : > { %v1261_v53 = vadd.f32 %v1768_v15, %v1245_v13 }
 0x4b0   : > { %v1084_v26 = vpop.f32.mrf.mxu0 }
 0x4b1   : > { %1277 = vst.msk [vmem:[#allocation5 + $0x10] sm:$0xff] %vm576_vm8, %v1261_v53  ;;  %v1259_v38 = vadd.f32 %v1243_v17, %v1084_v26 }
 0x4b2   : > { %v1769_v19 = vpop.f32.mrf.mxu0 }
 0x4b3   : > { %1275 = vst.msk [vmem:[#allocation5] sm:$0xff] %vm576_vm8, %v1259_v38  ;;  %v1262_v55 = vadd.f32 %v1769_v19, %v1246_v42 }
 0x4b4   : > { %v1087_v30 = vpop.f32.mrf.mxu0 }
 0x4b5   : > { %1278 = vst.msk [vmem:[#allocation5 + $0x18] sm:$0xff] %vm576_vm8, %v1262_v55  ;;  %v1260_v33 = vadd.f32 %v1244_v20, %v1087_v30 }
 0x4b7   : > { %1276 = vst.msk [vmem:[#allocation5 + $0x8] sm:$0xff] %vm576_vm8, %v1260_v33 }
 0x4c1   : > { %v1772_v23 = vpop.f32.mrf.mxu0 }
 0x4c2   : > { %v1265_v31 = vadd.f32 %v1772_v23, %v1249_v22 }
 0x4c3   : > { %v1100_v56 = vpop.f32.mrf.mxu0 }
 0x4c4   : > { %1281 = vst.msk [vmem:[#allocation5 + $0x30] sm:$0xff] %vm576_vm8, %v1265_v31  ;;  %v1263_v54 = vadd.f32 %v1247_v25, %v1100_v56 }
 0x4c5   : > { %v1773_v27 = vpop.f32.mrf.mxu0 }
 0x4c6   : > { %1279 = vst.msk [vmem:[#allocation5 + $0x20] sm:$0xff] %vm576_vm8, %v1263_v54  ;;  %v1266_v44 = vadd.f32 %v1773_v27, %v1250_v14 }
 0x4c7   : > { %v1103_v16 = vpop.f32.mrf.mxu0 }
 0x4c8   : > { %1282 = vst.msk [vmem:[#allocation5 + $0x38] sm:$0xff] %vm576_vm8, %v1266_v44  ;;  %v1264_v57 = vadd.f32 %v1248_v46, %v1103_v16 }
 0x4ca   : > { %1280 = vst.msk [vmem:[#allocation5 + $0x28] sm:$0xff] %vm576_vm8, %v1264_v57  ;;  %v1776_v5 = vpop.f32.mrf.mxu0 }
 0x4cb   : > { %v1269_v49 = vadd.f32 %v1776_v5, %v1253_v1 }
 0x4cc   : > { %v1116_v18 = vpop.f32.mrf.mxu0 }
 0x4cd   : > { %1285 = vst.msk [vmem:[#allocation5 + $0x50] sm:$0xff] %vm576_vm8, %v1269_v49  ;;  %v1267_v4 = vadd.f32 %v1251_v3, %v1116_v18 }
 0x4ce   : > { %v1777_v6 = vpop.f32.mrf.mxu0 }
 0x4cf   : > { %1283 = vst.msk [vmem:[#allocation5 + $0x40] sm:$0xff] %vm576_vm8, %v1267_v4  ;;  %v1270_v58 = vadd.f32 %v1777_v6, %v1254_v32 }
 0x4d0   : > { %v1119_v50 = vpop.f32.mrf.mxu0 }
 0x4d1   : > { %1286 = vst.msk [vmem:[#allocation5 + $0x58] sm:$0xff] %vm576_vm8, %v1270_v58  ;;  %v1268_v9 = vadd.f32 %v1252_v8, %v1119_v50 }
 0x4d3   : > { %1284 = vst.msk [vmem:[#allocation5 + $0x48] sm:$0xff] %vm576_vm8, %v1268_v9 }
 0x4d9   : > { %v1780_v41 = vpop.f32.mrf.mxu0 }
 0x4da   : > { %v1273_v40 = vadd.f32 %v1780_v41, %v1257_v48 }
 0x4db   : > { %v1132_v11 = vpop.f32.mrf.mxu0 }
 0x4dc   : > { %1289 = vst.msk [vmem:[#allocation5 + $0x70] sm:$0xff] %vm576_vm8, %v1273_v40  ;;  %v1271_v21 = vadd.f32 %v1255_v7, %v1132_v11 }
 0x4dd   : > { %v1781_v29 = vpop.f32.mrf.mxu0 }
 0x4de   : > { %1287 = vst.msk [vmem:[#allocation5 + $0x60] sm:$0xff] %vm576_vm8, %v1271_v21  ;;  %v1274_v13 = vadd.f32 %v1781_v29, %v1258_v28  ;;  %1310 = sbr.rel (%p1696_p8) target bundleno = 1661 (0x67d), region = 68 }
 0x4df   : > { %v1135_v37 = vpop.f32.mrf.mxu0 }
 0x4e0   : > { %1290 = vst.msk [vmem:[#allocation5 + $0x78] sm:$0xff] %vm576_vm8, %v1274_v13  ;;  %v1272_v15 = vadd.f32 %v1256_v12, %v1135_v37 }
 0x4e2   : > { %1288 = vst.msk [vmem:[#allocation5 + $0x68] sm:$0xff] %vm576_vm8, %v1272_v15 }
 0x4e3   : > { %v1341_v61 = vld [vmem:[#allocation4 + $0x70] sm:$0xff]  ;;  %v1339_v17 = vld [vmem:[#allocation4 + $0x60] sm:$0xff]  ;;  %v1342_v53 = vld [vmem:[#allocation4 + $0x78] sm:$0xff]  ;;  %v2244_v43 = vmov 0   ;;  %v2245_v31 = vmov 0.0   ;;  %vm2246_vm11 = vmmov 0  }
 0x4e4   : > { %2004 = vset.pattern.permute.xlu1 %v2244_v43  ;;  %2003 = vset.pattern.permute.xlu0 %v2244_v43  ;;  %2005 = vrcp.f32 %v1341_v61  ;;  %v1340_v63 = vld [vmem:[#allocation4 + $0x68] sm:$0xff]  ;;  %v1337_v26 = vld [vmem:[#allocation4 + $0x50] sm:$0xff]  ;;  %v1338_v42 = vld [vmem:[#allocation4 + $0x58] sm:$0xff] }
 0x4e5   : > { %2007 = vrcp.f32 %v1339_v17  ;;  %v1335_v38 = vld [vmem:[#allocation4 + $0x40] sm:$0xff]  ;;  %v1336_v19 = vld [vmem:[#allocation4 + $0x48] sm:$0xff]  ;;  %v1333_v20 = vld [vmem:[#allocation4 + $0x30] sm:$0xff]  ;;  %1782 = vmatprep.subr.bf16.mxu0 %v2245_v31  ;;  %1798 = vmatprep.mubr.msk.bf16.mxu0 %vm2246_vm11, %v2245_v31 }
 0x4e6   : > { %2009 = vrcp.f32 %v1342_v53  ;;  %v1334_v55 = vld [vmem:[#allocation4 + $0x38] sm:$0xff]  ;;  %v1331_v52 = vld [vmem:[#allocation4 + $0x20] sm:$0xff]  ;;  %v1332_v39 = vld [vmem:[#allocation4 + $0x28] sm:$0xff] }
 0x4e7   : > { %2011 = vrcp.f32 %v1340_v63  ;;  %v1329_v25 = vld [vmem:[#allocation4 + $0x10] sm:$0xff]  ;;  %v1330_v56 = vld [vmem:[#allocation4 + $0x18] sm:$0xff]  ;;  %v1327_v54 = vld [vmem:[#allocation4] sm:$0xff] }
 0x4e8   : > { %2013 = vrcp.f32 %v1337_v26  ;;  %v1328_v46 = vld [vmem:[#allocation4 + $0x8] sm:$0xff]  ;;  %v1464_v3 = vld [vmem:[%s3038_s3] sm:$0xff]  ;;  %v1325_v35 = vld [vmem:[#allocation5 + $0x70] sm:$0xff] }
 0x4e9   : > { %2015 = vrcp.f32 %v1338_v42  ;;  %v1326_v32 = vld [vmem:[#allocation5 + $0x78] sm:$0xff]  ;;  %v1323_v58 = vld [vmem:[#allocation5 + $0x60] sm:$0xff]  ;;  %v1324_v50 = vld [vmem:[#allocation5 + $0x68] sm:$0xff] }
 0x4ea   : > { %2017 = vrcp.f32 %v1335_v38  ;;  %v1322_v41 = vld [vmem:[#allocation5 + $0x58] sm:$0xff]  ;;  %v1321_v40 = vld [vmem:[#allocation5 + $0x50] sm:$0xff]  ;;  %v1320_v12 = vld [vmem:[#allocation5 + $0x48] sm:$0xff] }
 0x4eb   : > { %2019 = vrcp.f32 %v1336_v19  ;;  %v1319_v37 = vld [vmem:[#allocation5 + $0x40] sm:$0xff]  ;;  %v1318_v63 = vld [vmem:[#allocation5 + $0x38] sm:$0xff]  ;;  %v1317_v42 = vld [vmem:[#allocation5 + $0x30] sm:$0xff] }
 0x4ec   : > { %2021 = vrcp.f32 %v1333_v20 }
 0x4ed   : > { %2023 = vrcp.f32 %v1334_v55 }
 0x4ee   : > { %2025 = vrcp.f32 %v1331_v52  ;;  %v1315_v52 = vld [vmem:[#allocation5 + $0x20] sm:$0xff] }
 0x4ef   : > { %2027 = vrcp.f32 %v1332_v39 }
 0x4f0   : > { %2029 = vrcp.f32 %v1329_v25 }
 0x4f1   : > { %v2006_v30 = vpop.eup %2005  ;;  %2031 = vrcp.f32 %v1330_v56  ;;  %v1314_v56 = vld [vmem:[#allocation5 + $0x18] sm:$0xff] }
 0x4f2   : > { %v2008_v33 = vpop.eup %2007  ;;  %1431 = vperm.xlu0 %2003, %v2006_v30   ;;  %2033 = vrcp.f32 %v1327_v54  ;;  %v1313_v54 = vld [vmem:[#allocation5 + $0x10] sm:$0xff] }
 0x4f3   : > { %v2010_v47 = vpop.eup %2009  ;;  %1421 = vperm.xlu1 %2004, %v2008_v33   ;;  %2035 = vrcp.f32 %v1328_v46  ;;  %v1316_v33 = vld [vmem:[#allocation5 + $0x28] sm:$0xff] }
 0x4f4   : > { %v2012_v22 = vpop.eup %2011 }
 0x4f5   : > { %v2014_v23 = vpop.eup %2013 }
 0x4f6   : > { %1436 = vperm.xlu0 %2003, %v2010_v47   ;;  %v2016_v45 = vpop.eup %2015 }
 0x4f7   : > { %1426 = vperm.xlu1 %2004, %v2012_v22   ;;  %v2018_v14 = vpop.eup %2017 }
 0x4f8   : > { %v2020_v27 = vpop.eup %2019 }
 0x4f9   : > { %v2022_v62 = vpop.eup %2021 }
 0x4fa   : > { %1411 = vperm.xlu0 %2003, %v2014_v23   ;;  %v2024_v44 = vpop.eup %2023 }
 0x4fb   : > { %1416 = vperm.xlu1 %2004, %v2016_v45   ;;  %v2026_v16 = vpop.eup %2025 }
 0x4fc   : > { %v2028_v10 = vpop.eup %2027 }
 0x4fd   : > { %v2030_v57 = vpop.eup %2029 }
 0x4fe   : > { %1401 = vperm.xlu0 %2003, %v2018_v14   ;;  %v2032_v1 = vpop.eup %2031 }
 0x4ff   : > { %1406 = vperm.xlu1 %2004, %v2020_v27   ;;  %v2034_v2 = vpop.eup %2033 }
 0x500   : > { %v2036_v5 = vpop.eup %2035 }
 0x502   : > { %1391 = vperm.xlu0 %2003, %v2022_v62  }
 0x503   : > { %1396 = vperm.xlu1 %2004, %v2024_v44  }
 0x506   : > { %1381 = vperm.xlu0 %2003, %v2026_v16  }
 0x507   : > { %1386 = vperm.xlu1 %2004, %v2028_v10   ;;  %v1312_v10 = vld [vmem:[#allocation5 + $0x8] sm:$0xff] }
 0x50a   : > { %1371 = vperm.xlu0 %2003, %v2030_v57  }
 0x50b   : > { %1376 = vperm.xlu1 %2004, %v2032_v1   ;;  %v1311_v1 = vld [vmem:[#allocation5] sm:$0xff] }
 0x50e   : > { %1361 = vperm.xlu0 %2003, %v2034_v2  }
 0x50f   : > { %1366 = vperm.xlu1 %2004, %v2036_v5  }
 0x512   : > { %1467 = vperm.xlu0 %2003, %v1464_v3  }
 0x56d   : > { %v1432_v49 = vpop.permute.xlu0 %1431 }
 0x56e   : > { %v1422_v18 = vpop.permute.xlu1 %1421  ;;  %v1453_v6 = vmul.f32 %v1432_v49, %v1325_v35 }
 0x56f   : > { %v1451_v36 = vmul.f32 %v1422_v18, %v1323_v58  ;;  %v1455_v18 = vld [vmem:[%s3039_s23] sm:$0xf] }
 0x571   : > { %v1437_v4 = vpop.permute.xlu0 %1436 }
 0x572   : > { %v1454_v8 = vmul.f32 %v1437_v4, %v1326_v32  ;;  %v1427_v60 = vpop.permute.xlu1 %1426 }
 0x573   : > { %v1452_v34 = vmul.f32 %v1427_v60, %v1324_v50 }
 0x574   : > { %v1463_v9 = vpack.c.bf16 %v1454_v8, %v1453_v6 }
 0x575   : > { %v1462_v59 = vpack.c.bf16 %v1452_v34, %v1451_v36  ;;  %v1412_v7 = vpop.permute.xlu0 %1411 }
 0x576   : > { %v1495_v48 = vsel %vm576_vm8, %v1463_v9, 0  ;;  %v1417_v24 = vpop.permute.xlu1 %1416  ;;  %v1449_v11 = vmul.f32 %v1412_v7, %v1321_v40 }
 0x577   : > { %1783 = vmatpush3.bf16.xpose.msra.mxu0 %v1495_v48  ;;  %v1450_v51 = vmul.f32 %v1417_v24, %v1322_v41  ;;  %v1492_v28 = vsel %vm576_vm8, %v1462_v59, 0 }
 0x578   : > { %1784 = vmatprep.subr.bf16.mxu0 %v2245_v31 }
 0x579   : > { %v1461_v21 = vpack.c.bf16 %v1450_v51, %v1449_v11  ;;  %v1402_v13 = vpop.permute.xlu0 %1401 }
 0x57a   : > { %v1407_v29 = vpop.permute.xlu1 %1406  ;;  %v1447_v61 = vmul.f32 %v1402_v13, %v1319_v37 }
 0x57b   : > { %v1448_v15 = vmul.f32 %v1407_v29, %v1320_v12  ;;  %v1489_v17 = vsel %vm576_vm8, %v1461_v21, 0 }
 0x57d   : > { %v1460_v53 = vpack.c.bf16 %v1448_v15, %v1447_v61  ;;  %v1392_v26 = vpop.permute.xlu0 %1391 }
 0x57e   : > { %v1397_v43 = vpop.permute.xlu1 %1396  ;;  %v1445_v19 = vmul.f32 %v1392_v26, %v1317_v42 }
 0x57f   : > { %1785 = vmatpush3.bf16.xpose.msra.mxu0 %v1492_v28  ;;  %v1446_v38 = vmul.f32 %v1397_v43, %v1318_v63  ;;  %v1486_v20 = vsel %vm576_vm8, %v1460_v53, 0 }
 0x580   : > { %1786 = vmatprep.subr.bf16.mxu0 %v2245_v31 }
 0x581   : > { %v1459_v55 = vpack.c.bf16 %v1446_v38, %v1445_v19  ;;  %v1382_v47 = vpop.permute.xlu0 %1381 }
 0x582   : > { %v1387_v30 = vpop.permute.xlu1 %1386  ;;  %v1443_v39 = vmul.f32 %v1382_v47, %v1315_v52 }
 0x583   : > { %v1444_v22 = vmul.f32 %v1387_v30, %v1316_v33  ;;  %v1483_v23 = vsel %vm576_vm8, %v1459_v55, 0 }
 0x585   : > { %v1458_v25 = vpack.c.bf16 %v1444_v22, %v1443_v39  ;;  %v1372_v14 = vpop.permute.xlu0 %1371 }
 0x586   : > { %v1377_v45 = vpop.permute.xlu1 %1376  ;;  %v1441_v46 = vmul.f32 %v1372_v14, %v1313_v54 }
 0x587   : > { %1787 = vmatpush3.bf16.xpose.msra.mxu0 %v1489_v17  ;;  %v1442_v27 = vmul.f32 %v1377_v45, %v1314_v56  ;;  %v1480_v62 = vsel %vm576_vm8, %v1458_v25, 0 }
 0x588   : > { %1788 = vmatprep.subr.bf16.mxu0 %v2245_v31 }
 0x589   : > { %v1457_v44 = vpack.c.bf16 %v1442_v27, %v1441_v46  ;;  %v1362_v57 = vpop.permute.xlu0 %1361 }
 0x58a   : > { %v1367_v16 = vpop.permute.xlu1 %1366  ;;  %v1439_v5 = vmul.f32 %v1362_v57, %v1311_v1 }
 0x58b   : > { %v1440_v2 = vmul.f32 %v1367_v16, %v1312_v10  ;;  %v1477_v3 = vsel %vm576_vm8, %v1457_v44, 0 }
 0x58d   : > { %v1456_v49 = vpack.c.bf16 %v1440_v2, %v1439_v5  ;;  %v1468_v32 = vpop.permute.xlu0 %1467 }
 0x58f   : > { %1789 = vmatpush3.bf16.xpose.msra.mxu0 %v1486_v20  ;;  %v1474_v35 = vsel %vm576_vm8, %v1456_v49, 0 }
 0x590   : > { %1790 = vmatprep.subr.bf16.mxu0 %v2245_v31 }
 0x597   : > { %1791 = vmatpush3.bf16.xpose.msra.mxu0 %v1483_v23 }
 0x598   : > { %1792 = vmatprep.subr.bf16.mxu0 %v2245_v31 }
 0x59f   : > { %1793 = vmatpush3.bf16.xpose.msra.mxu0 %v1480_v62 }
 0x5a0   : > { %1794 = vmatprep.subr.bf16.mxu0 %v2245_v31 }
 0x5a7   : > { %1795 = vmatpush3.bf16.xpose.msra.mxu0 %v1477_v3 }
 0x5a8   : > { %1796 = vmatprep.subr.bf16.mxu0 %v2245_v31 }
 0x5af   : > { %1797 = vmatpush3.bf16.xpose.msra.mxu0 %v1474_v35 }
 0x5b6   : > { %1799 = vmatmul.mubr.msk.bf16.vlgmr.msra.gmra.mxu0 %vm576_vm8, %v1455_v18 }
 0x676   : > { %v1531_v4 = vpop.f32.mrf.mxu0 }
 0x677   : > { %v1532_v6 = vadd.f32 %v1531_v4, %v1468_v32 }
 0x678   : > { %v1800_v8 = vpop.f32.mrf.mxu0 }
 0x679   : > { %v1537_v58 = vadd.f32 %v1532_v6, %v2502_v0 }
 0x67a   : > { %v1534_v50 = vpop.f32.mrf.mxu0 }
 0x67b   : > { %1538 = vst [vmem:[%s2508_s24] sm:$0xff] %v1537_v58 }
 0x67c   : > { %v1801_v9 = vpop.f32.mrf.mxu0 }
 0x67d PF: > { %s3040_s26 = sld [smem:[#allocation17_spill]]  ;;  %s1555_s13 = sshll.u32 %s2508_s24, 4  ;;  %s1556_s13 = int_to_ptr.vmem [resolvable:$true] %s1555_s13 }
 0x67e   : > { %s3041_s18 = sld [smem:[#allocation16_spill]]  ;;  %s1540_s7 = scalar_lea.sflag [#allocation8], %s2489_s2 }
 0x67f   : > { %s3042_s6 = sld [smem:[#allocation19_spill]]  ;;  %s2093_s11 = scalar_lea.vmem %s1556_s13, 128 }
 0x680   : > { %s3043_s19 = sld [smem:[#allocation30_spill]]  ;;  %p2094_p1 = scmp.ne.s32.totalorder %s1556_s13, %s2093_s11 }
 0x681   : > { %s2247_s8 = smov [#allocation11]  }
 0x682   : > { %s2097_s3 = sshll.u32 %s2247_s8, 4  ;;  %s2098_s3 = int_to_ptr.vmem [resolvable:$false] %s2097_s3 }
 0x683   : > { %s1699_s20 = sshll.u32 %s3040_s26, 1  ;;  %s2099_s5 = scalar_lea.vmem %s2098_s3, 256 }
 0x684   : > { %s1551_s22 = sadd.s32 %s3041_s18, %s1699_s20  ;;  %p2100_p9 = scmp.lt.s32.totalorder %s1556_s13, %s2098_s3 }
 0x685   : > { %s1700_s4 = sshll.u32 %s1551_s22, 7  ;;  %p3044_p12 = scmp.ne.s32.totalorder %s3042_s6, 0 }
 0x686   : > { %s1553_s25 = scalar_lea.hbm %s3043_s19, %s1700_s4  ;;  %p2101_p10 = scmp.lt.s32.totalorder %s2099_s5, %s2093_s11 }
 0x687   : > { %p2095_p6 = pnand %p2094_p1, %p3044_p12 }
 0x688   : > { %p2102_p0 = por %p2101_p10, %p2100_p9 }
 0x689   : > { %p2096_p5 = pneg %p2095_p6 }
 0x68b   : > { %p2103_p11 = pnand %p2102_p0, %p2096_p5 }
 0x68d   : > { %2106 = shalt.err (!%p2103_p11)
}
 0x68e   : > { %s2107_s24 = scalar_lea.hbm %s1553_s25, 128  ;;  %s2111_s23 = scalar_lea.hbm %s3043_s19, 512 }
 0x68f   : > { %p2108_p13 = scmp.ne.s32.totalorder %s1553_s25, %s2107_s24  ;;  %p2112_p3 = scmp.lt.s32.totalorder %s1553_s25, %s3043_s19 }
 0x690   : > { %p2113_p7 = scmp.lt.s32.totalorder %s2111_s23, %s2107_s24 }
 0x691   : > { %p2109_p2 = pnand %p2108_p13, %p3044_p12 }
 0x692   : > { %p2114_p8 = por %p2113_p7, %p2112_p3 }
 0x693   : > { %p2110_p4 = pneg %p2109_p2 }
 0x695   : > { %p2115_p1 = pnand %p2114_p8, %p2110_p4 }
 0x697   : > { %2118 = shalt.err (!%p2115_p1)
}
 0x698   : > { %1807 = dma.vmem_to_hbm [thread:$0]  (%p3044_p12), %s1556_s13, 128, %s1553_s25, %s1540_s7  }
 0x699 PF: > { %s3045_s20 = sld [smem:[#allocation15_spill]]  ;;  %p1821_p6 = scmp.ge.s32.totalorder %s2233_s17, 2 }
 0x69a   : > { %s3046_s22 = sld [smem:[#allocation20_spill]] }
 0x69f   : > { %s1567_s4 = sand.u32 1, %s3045_s20  }
 0x6a0   : > { %p3047_p5 = scmp.ne.s32.totalorder %s3046_s22, 0  ;;  %s1568_s21 = scalar_lea.sflag [#allocation8], %s1567_s4 }
 0x6a2   : > { %p1817_p9 = pnand %p1821_p6, %p3047_p5 }
 0x6a4   : > { %p1818_p10 = pneg %p1817_p9 }
 0x6a6   : > { %2180 = dma.done.wait (%p1818_p10), %s1568_s21, 128  }
 0x6a7   : > { %2182 = vsyncadd (%p1818_p10), %s1568_s21, 4294967168  ;;  %s27_s17 = sadd.s32 1, %s2233_s17   ;;  %s3049_s12 = sld [smem:[#allocation18_spill]] }
 0x6a8   : > { %p2938_p0 = scmp.ge.s32.totalorder %s27_s17, 10   ;;  %s3050_s6 = sld [smem:[#allocation21_spill]] }
 0x6a9   : > { %s3051_s25 = sld [smem:[#allocation22_spill]]  ;;  %s3052_s7 = smov %s3074_s30 }
 0x6aa   : > { %s3054_s27 = smov %s2189_s28  ;;  %s3055_s28 = smov %s2193_s29 }
 0x6ab   : > { %s3056_s29 = smov %s2480_s0  ;;  %s3057_s30 = smov %s2201_s9 }
 0x6ac   : > { %s3058_s9 = smov %s2205_s10  ;;  %s3059_s10 = smov %s2477_s15 }
 0x6ad   : > { %s3060_s11 = smov %s2221_s14  ;;  %s3061_s13 = smov %s2229_s16 }
 0x6ae   : > { %s3062_s14 = smov %s3050_s6  ;;  %s3064_s16 = smov %s3052_s7 }
 0x6af   : > { %s3063_s15 = smov %s3051_s25  ;;  %26 = sbr.rel (!%p2938_p0) target bundleno = 21 (0x15), region = 118 }
 0x6b4   :  { %1573 = vsyncpa [#allocation7], 1 }
 0x6b5   :  { %1575 = vsyncpa [#allocation7 + $0x1], 1 }
 0x6b6   :  { %1576 = vsyncpa [#allocation10], 1 }
 0x6b7   :  { %1578 = vsyncpa [#allocation10 + $0x1], 1 }
 0x6b8   :  { %1579 = vsyncpa [#allocation8], 1 }
 0x6b9   :  { %1581 = vsyncpa [#allocation8 + $0x1], 1 }

</bundles_post_ra>
